<compile_context>
chip_gen: v7x
topology: tpu7x:2x2x1
jax: 0.10.0
libtpu: 0.0.40
codegen_flags: <defaults>
</compile_context>

<pallas_src>
import jax
import jax.numpy as jnp
from jax import lax
from jax.experimental import pallas as pl
from jax.experimental.pallas import tpu as pltpu


def _round_up(x, m):
    return ((x + m - 1) // m) * m


# ---------------------------------------------------------------------------
# Fused GRU encoder kernel (input projection + serial recurrence per block).
#   emb_ref : (Tt, Bb, Hp)  emb block (matmul dtype)
#   lens_ref: (Bb, 1)       int32 sequence lengths (constant per batch block)
#   wih_ref : (3, Hp, Hp)   W_ih^T per gate (r|z|n), gate-major
#   whh_ref : (3, Hp, Hp)   W_hh^T per gate
#   bias_ref: (3, 1, Hp)    b_ih (+ b_hh folded for r,z)
#   bhn_ref : (1, Hp)       b_hh n-gate bias (stays inside r * (.))
#   out_ref : (Tt, Bb, Hp)  encoder_pad block (f32)
#   hlast_ref: (1, Bb, Hp)  encoder_last_hidden (resident across time axis)
#   h_scratch: (Bb, Hp)     carried hidden state (f32)
#   gx{r,z,n}_s: (Tt, Bb, Hp) per-gate precomputed input projections (f32)
# ---------------------------------------------------------------------------
def gru_encoder_kernel(emb_ref, lens_ref, wih_ref, whh_ref, bias_ref, bhn_ref,
                       out_ref, hlast_ref, h_scratch, gxr_s, gxz_s, gxn_s):
    ti = pl.program_id(1)
    Tt, Bb, Hp = out_ref.shape

    @pl.when(ti == 0)
    def _():
        # encoder_init_hidden=None in PyTorch => zeros
        h_scratch[...] = jnp.zeros_like(h_scratch)

    # --- Fused, hoisted input projection for the whole time block ----------
    # One big GEMM per gate (gate-major => each result tile is lane-dense).
    x2d = emb_ref[...].reshape(Tt * Bb, Hp)
    gxr_s[...] = (jnp.dot(x2d, wih_ref[0], preferred_element_type=jnp.float32)
                  + bias_ref[0]).reshape(Tt, Bb, Hp)
    gxz_s[...] = (jnp.dot(x2d, wih_ref[1], preferred_element_type=jnp.float32)
                  + bias_ref[1]).reshape(Tt, Bb, Hp)
    gxn_s[...] = (jnp.dot(x2d, wih_ref[2], preferred_element_type=jnp.float32)
                  + bias_ref[2]).reshape(Tt, Bb, Hp)

    # Hoist constant loads / broadcasts out of the serial time loop.
    whh_r = whh_ref[0]
    whh_z = whh_ref[1]
    whh_n = whh_ref[2]
    bhn = bhn_ref[...]                                   # (1, Hp)
    lens = lens_ref[...]                                 # (Bb, 1) int32
    t0 = ti * Tt

    def step(lt, h):
        hc = h.astype(whh_r.dtype)
        gh_r = jnp.dot(hc, whh_r, preferred_element_type=jnp.float32)
        gh_z = jnp.dot(hc, whh_z, preferred_element_type=jnp.float32)
        gh_n = jnp.dot(hc, whh_n, preferred_element_type=jnp.float32)
        r = jax.nn.sigmoid(gxr_s[lt] + gh_r)
        z = jax.nn.sigmoid(gxz_s[lt] + gh_z)
        n = jnp.tanh(gxn_s[lt] + r * (gh_n + bhn))
        h_new = (1.0 - z) * n + z * h
        keep = lens > (t0 + lt)                          # (Bb, 1) bool
        out_ref[lt] = jnp.where(keep, h_new, 0.0)        # pad with zeros
        return jnp.where(keep, h_new, h)                 # freeze past length

    # Capped unroll: LLO visibility without blowing the 64-vreg budget.
    h = lax.fori_loop(0, Tt, step, h_scratch[...], unroll=min(Tt, 8))
    h_scratch[...] = h

    @pl.when(ti == pl.num_programs(1) - 1)
    def _():
        hlast_ref[0] = h                                 # == h at t = len-1


def pallas_gru_encoder(emb, lengths, w_ih, w_hh, b_ih, b_hh, *,
                       time_block=32, batch_block=None,
                       lane_pad=True, matmul_dtype=jnp.float32):
    """emb: (T, B, H) f32; lengths: (B,) int; PyTorch-layout GRU params."""
    T, B, H = emb.shape
    f32 = jnp.float32

    Hp = _round_up(H, 128) if lane_pad else H            # lane-dense hidden dim
    Bb = B if batch_block is None else batch_block
    assert B % Bb == 0, "batch_block must divide B"
    Tt = min(time_block, T)
    Tp = _round_up(T, Tt)

    emb = emb.astype(f32)
    if Tp != T or Hp != H:
        emb = jnp.pad(emb, ((0, Tp - T), (0, 0), (0, Hp - H)))
    emb_in = emb.astype(matmul_dtype)

    lens_col = lengths.astype(jnp.int32).reshape(B, 1)

    def split_pad_t(w):
        # PyTorch (3H, H) row-blocks [r; z; n] -> gate-major stack of W_g^T,
        # zero-padded to (Hp, Hp). Zero pads keep padded hidden lanes at 0.
        w = w.astype(f32)
        gates = [jnp.pad(w[g * H:(g + 1) * H, :].T,
                         ((0, Hp - H), (0, Hp - H))) for g in range(3)]
        return jnp.stack(gates, axis=0)

    wih_g = split_pad_t(w_ih).astype(matmul_dtype)       # (3, Hp, Hp)
    whh_g = split_pad_t(w_hh).astype(matmul_dtype)       # (3, Hp, Hp)

    b_ih = b_ih.astype(f32)
    b_hh = b_hh.astype(f32)

    def pad_b(v):
        return jnp.pad(v, (0, Hp - H))

    # Fold b_hh's r/z parts into the hoisted projection bias; keep only the
    # n-gate hidden bias for the recurrence (it sits inside r * (.)).
    bias_g = jnp.stack([pad_b(b_ih[:H] + b_hh[:H]),
                        pad_b(b_ih[H:2 * H] + b_hh[H:2 * H]),
                        pad_b(b_ih[2 * H:])], axis=0).reshape(3, 1, Hp)
    bhn = pad_b(b_hh[2 * H:]).reshape(1, Hp)

    nb = B // Bb
    nt = Tp // Tt

    out, h_last = pl.pallas_call(
        gru_encoder_kernel,
        out_shape=(jax.ShapeDtypeStruct((Tp, B, Hp), f32),
                   jax.ShapeDtypeStruct((1, B, Hp), f32)),
        grid_spec=pltpu.PrefetchScalarGridSpec(
            num_scalar_prefetch=0,
            grid=(nb, nt),
            in_specs=[
                pl.BlockSpec((Tt, Bb, Hp), lambda bi, ti: (ti, bi, 0)),  # emb
                pl.BlockSpec((Bb, 1), lambda bi, ti: (bi, 0)),           # lens
                pl.BlockSpec((3, Hp, Hp), lambda bi, ti: (0, 0, 0)),     # W_ih^T
                pl.BlockSpec((3, Hp, Hp), lambda bi, ti: (0, 0, 0)),     # W_hh^T
                pl.BlockSpec((3, 1, Hp), lambda bi, ti: (0, 0, 0)),      # biases
                pl.BlockSpec((1, Hp), lambda bi, ti: (0, 0)),            # b_hn
            ],
            out_specs=[
                pl.BlockSpec((Tt, Bb, Hp), lambda bi, ti: (ti, bi, 0)),  # enc_pad
                pl.BlockSpec((1, Bb, Hp), lambda bi, ti: (0, bi, 0)),    # last h
            ],
            scratch_shapes=[
                pltpu.VMEM((Bb, Hp), f32),        # carried hidden state
                pltpu.VMEM((Tt, Bb, Hp), f32),    # gx_r
                pltpu.VMEM((Tt, Bb, Hp), f32),    # gx_z
                pltpu.VMEM((Tt, Bb, Hp), f32),    # gx_n
            ],
        ),
        compiler_params=pltpu.CompilerParams(
            # batch axis is independent (v7x megacore); time axis is serial.
            dimension_semantics=("parallel", "arbitrary"),
            vmem_limit_bytes=32 * 1024 * 1024,
        ),
    )(emb_in, lens_col, wih_g, whh_g, bias_g, bhn)

    return out[:T, :, :H], h_last[:, :, :H]


def encoder_forward(params, input_word_index, input_real_length):
    """Mirrors Encoder.forward. input_word_index: (T, B) int32 (time-major)."""
    # Embedding gather (plain-JAX glue; the GRU math runs in the Pallas kernel).
    embedded = jnp.take(params["embedding"], input_word_index, axis=0)  # (T,B,H)
    embedded = embedded.astype(jnp.float32)
    enc_pad, enc_last_hidden = pallas_gru_encoder(
        embedded, input_real_length,
        params["w_ih"], params["w_hh"], params["b_ih"], params["b_hh"])
    return enc_pad, enc_last_hidden


def reference_forward(params, input_word_index, input_real_length):
    """Pure-JAX reference of the same semantics (for verification)."""
    emb = jnp.take(params["embedding"], input_word_index, axis=0).astype(jnp.float32)
    T, B, H = emb.shape
    wih_t = params["w_ih"].T
    whh_t = params["w_hh"].T
    b_ih = params["b_ih"]
    b_hh = params["b_hh"]
    lengths = input_real_length.astype(jnp.int32)

    def step(h, inp):
        x, t = inp
        gx = x @ wih_t + b_ih
        gh = h @ whh_t + b_hh
        r = jax.nn.sigmoid(gx[:, :H] + gh[:, :H])
        z = jax.nn.sigmoid(gx[:, H:2 * H] + gh[:, H:2 * H])
        n = jnp.tanh(gx[:, 2 * H:] + r * gh[:, 2 * H:])
        h_new = (1.0 - z) * n + z * h
        mask = (lengths > t).astype(jnp.float32)[:, None]
        h_upd = mask * h_new + (1.0 - mask) * h
        return h_upd, mask * h_new

    h_last, outs = lax.scan(step, jnp.zeros((B, H), jnp.float32),
                            (emb, jnp.arange(T)))
    return outs, h_last[None]


def init_params(key, vocab_size, hidden_dim):
    """Deterministic synthetic init matching PyTorch parameter shapes."""
    k_emb, k1, k2, k3, k4 = jax.random.split(key, 5)
    bound = 1.0 / jnp.sqrt(hidden_dim)
    return {
        "embedding": jax.random.normal(k_emb, (vocab_size, hidden_dim), jnp.float32),
        "w_ih": jax.random.uniform(k1, (3 * hidden_dim, hidden_dim), jnp.float32,
                                   -bound, bound),
        "w_hh": jax.random.uniform(k2, (3 * hidden_dim, hidden_dim), jnp.float32,
                                   -bound, bound),
        "b_ih": jax.random.uniform(k3, (3 * hidden_dim,), jnp.float32, -bound, bound),
        "b_hh": jax.random.uniform(k4, (3 * hidden_dim,), jnp.float32, -bound, bound),
    }


if __name__ == "__main__":
    VOCAB = 50
    HIDDEN = 32
    T = 8       # max sequence length
    B = 8       # batch

    key = jax.random.PRNGKey(0)
    k_params, k_tokens = jax.random.split(key)

    params = init_params(k_params, VOCAB, HIDDEN)

    # Time-major token indices (T, B) and descending lengths (pack_padded req).
    input_word_index = jax.random.randint(k_tokens, (T, B), 0, VOCAB, jnp.int32)
    input_real_length = jnp.array([8, 8, 7, 6, 5, 4, 3, 2], jnp.int32)

    enc_pad, enc_last_hidden = encoder_forward(params, input_word_index,
                                               input_real_length)
    jax.block_until_ready((enc_pad, enc_last_hidden))

    ref_pad, ref_last = reference_forward(params, input_word_index,
                                          input_real_length)
    assert enc_pad.shape == (T, B, HIDDEN)
    assert enc_last_hidden.shape == (1, B, HIDDEN)
    assert jnp.allclose(enc_pad, ref_pad, atol=1e-5, rtol=1e-5)
    assert jnp.allclose(enc_last_hidden, ref_last, atol=1e-5, rtol=1e-5)

    print("KERNEL_OK")
</pallas_src>

<mosaic_0001>
module attributes {stable_mosaic.version = 11 : i64} {
  func.func @gru_encoder_kernel(%arg0: i32, %arg1: i32, %arg2: memref<8x8x128xf32, #tpu.memory_space<vmem>>, %arg3: memref<8x1xi32, #tpu.memory_space<vmem>>, %arg4: memref<3x128x128xf32, #tpu.memory_space<vmem>>, %arg5: memref<3x128x128xf32, #tpu.memory_space<vmem>>, %arg6: memref<3x1x128xf32, #tpu.memory_space<vmem>>, %arg7: memref<1x128xf32, #tpu.memory_space<vmem>>, %arg8: memref<8x8x128xf32, #tpu.memory_space<vmem>>, %arg9: memref<1x8x128xf32, #tpu.memory_space<vmem>>, %arg10: memref<8x128xf32, #tpu.memory_space<vmem>>, %arg11: memref<8x8x128xf32, #tpu.memory_space<vmem>>, %arg12: memref<8x8x128xf32, #tpu.memory_space<vmem>>, %arg13: memref<8x8x128xf32, #tpu.memory_space<vmem>>) attributes {dimension_semantics = [#tpu.dimension_semantics<parallel>, #tpu.dimension_semantics<arbitrary>], iteration_bounds = array<i64: 1, 1>, scalar_prefetch = 0 : i64, scratch_operands = 4 : i64, tpu.core_type = #tpu.core_type<tc>, window_params = [{transform_indices = @transform_0, window_bounds = array<i64: 8, 8, 128>}, {transform_indices = @transform_1, window_bounds = array<i64: 8, 1>}, {pipeline_mode = #tpu.pipeline_mode<synchronous>, transform_indices = @transform_2, window_bounds = array<i64: 3, 128, 128>}, {pipeline_mode = #tpu.pipeline_mode<synchronous>, transform_indices = @transform_3, window_bounds = array<i64: 3, 128, 128>}, {pipeline_mode = #tpu.pipeline_mode<synchronous>, transform_indices = @transform_4, window_bounds = array<i64: 3, 1, 128>}, {pipeline_mode = #tpu.pipeline_mode<synchronous>, transform_indices = @transform_5, window_bounds = array<i64: 1, 128>}, {transform_indices = @transform_6, window_bounds = array<i64: 8, 8, 128>}, {transform_indices = @transform_7, window_bounds = array<i64: 1, 8, 128>}]} {
    %c0_i32 = arith.constant 0 : i32
    %0 = arith.cmpi eq, %arg1, %c0_i32 : i32
    %1 = arith.extui %0 : i1 to i32
    %c0_i32_0 = arith.constant 0 : i32
    %2 = arith.cmpi ne, %1, %c0_i32_0 : i32
    scf.if %2 {
      %cst_171 = arith.constant 0.000000e+00 : f32
      %430 = vector.broadcast %cst_171 : f32 to vector<8x128xf32>
      %c0_172 = arith.constant 0 : index
      %c0_173 = arith.constant 0 : index
      %431 = vector.load %arg10[%c0_172, %c0_173] : memref<8x128xf32, #tpu.memory_space<vmem>>, vector<8x128xf32>
      tpu.vector_store %arg10[%c0_172, %c0_173], %430 {strides = array<i32>} : memref<8x128xf32, #tpu.memory_space<vmem>>, vector<8x128xf32>,
    } else {
    }
    %c0 = arith.constant 0 : index
    %c0_1 = arith.constant 0 : index
    %c0_2 = arith.constant 0 : index
    %3 = vector.load %arg2[%c0, %c0_1, %c0_2] : memref<8x8x128xf32, #tpu.memory_space<vmem>>, vector<8x8x128xf32>
    %4 = vector.shape_cast %3 : vector<8x8x128xf32> to vector<64x128xf32>
    %c0_3 = arith.constant 0 : index
    %c0_4 = arith.constant 0 : index
    %c0_5 = arith.constant 0 : index
    %5 = vector.load %arg4[%c0_3, %c0_4, %c0_5] : memref<3x128x128xf32, #tpu.memory_space<vmem>>, vector<1x128x128xf32>
    %6 = vector.shape_cast %5 : vector<1x128x128xf32> to vector<128x128xf32>
    %cst = arith.constant dense<0.000000e+00> : vector<64x128xf32>
    %7 = tpu.matmul %4, %6, %cst {dimension_numbers = #tpu.dot_dimension_numbers<[1], [0], [0], [1], [0, 0, 1, 1], [], []>} : vector<64x128xf32>, vector<128x128xf32>, vector<64x128xf32> -> vector<64x128xf32>
    %c0_6 = arith.constant 0 : index
    %c0_7 = arith.constant 0 : index
    %c0_8 = arith.constant 0 : index
    %8 = vector.load %arg6[%c0_6, %c0_7, %c0_8] : memref<3x1x128xf32, #tpu.memory_space<vmem>>, vector<1x1x128xf32>
    %9 = vector.shape_cast %8 : vector<1x1x128xf32> to vector<1x128xf32>
    %10 = vector.broadcast %9 : vector<1x128xf32> to vector<64x128xf32>
    %11 = arith.addf %7, %10 : vector<64x128xf32>
    %12 = vector.shape_cast %11 : vector<64x128xf32> to vector<8x8x128xf32>
    %c0_9 = arith.constant 0 : index
    %c0_10 = arith.constant 0 : index
    %c0_11 = arith.constant 0 : index
    %13 = vector.load %arg11[%c0_9, %c0_10, %c0_11] : memref<8x8x128xf32, #tpu.memory_space<vmem>>, vector<8x8x128xf32>
    tpu.vector_store %arg11[%c0_9, %c0_10, %c0_11], %12 {strides = array<i32>} : memref<8x8x128xf32, #tpu.memory_space<vmem>>, vector<8x8x128xf32>,
    %c1 = arith.constant 1 : index
    %c0_12 = arith.constant 0 : index
    %c0_13 = arith.constant 0 : index
    %14 = vector.load %arg4[%c1, %c0_12, %c0_13] : memref<3x128x128xf32, #tpu.memory_space<vmem>>, vector<1x128x128xf32>
    %15 = vector.shape_cast %14 : vector<1x128x128xf32> to vector<128x128xf32>
    %cst_14 = arith.constant dense<0.000000e+00> : vector<64x128xf32>
    %16 = tpu.matmul %4, %15, %cst_14 {dimension_numbers = #tpu.dot_dimension_numbers<[1], [0], [0], [1], [0, 0, 1, 1], [], []>} : vector<64x128xf32>, vector<128x128xf32>, vector<64x128xf32> -> vector<64x128xf32>
    %c1_15 = arith.constant 1 : index
    %c0_16 = arith.constant 0 : index
    %c0_17 = arith.constant 0 : index
    %17 = vector.load %arg6[%c1_15, %c0_16, %c0_17] : memref<3x1x128xf32, #tpu.memory_space<vmem>>, vector<1x1x128xf32>
    %18 = vector.shape_cast %17 : vector<1x1x128xf32> to vector<1x128xf32>
    %19 = vector.broadcast %18 : vector<1x128xf32> to vector<64x128xf32>
    %20 = arith.addf %16, %19 : vector<64x128xf32>
    %21 = vector.shape_cast %20 : vector<64x128xf32> to vector<8x8x128xf32>
    %c0_18 = arith.constant 0 : index
    %c0_19 = arith.constant 0 : index
    %c0_20 = arith.constant 0 : index
    %22 = vector.load %arg12[%c0_18, %c0_19, %c0_20] : memref<8x8x128xf32, #tpu.memory_space<vmem>>, vector<8x8x128xf32>
    tpu.vector_store %arg12[%c0_18, %c0_19, %c0_20], %21 {strides = array<i32>} : memref<8x8x128xf32, #tpu.memory_space<vmem>>, vector<8x8x128xf32>,
    %c2 = arith.constant 2 : index
    %c0_21 = arith.constant 0 : index
    %c0_22 = arith.constant 0 : index
    %23 = vector.load %arg4[%c2, %c0_21, %c0_22] : memref<3x128x128xf32, #tpu.memory_space<vmem>>, vector<1x128x128xf32>
    %24 = vector.shape_cast %23 : vector<1x128x128xf32> to vector<128x128xf32>
    %cst_23 = arith.constant dense<0.000000e+00> : vector<64x128xf32>
    %25 = tpu.matmul %4, %24, %cst_23 {dimension_numbers = #tpu.dot_dimension_numbers<[1], [0], [0], [1], [0, 0, 1, 1], [], []>} : vector<64x128xf32>, vector<128x128xf32>, vector<64x128xf32> -> vector<64x128xf32>
    %c2_24 = arith.constant 2 : index
    %c0_25 = arith.constant 0 : index
    %c0_26 = arith.constant 0 : index
    %26 = vector.load %arg6[%c2_24, %c0_25, %c0_26] : memref<3x1x128xf32, #tpu.memory_space<vmem>>, vector<1x1x128xf32>
    %27 = vector.shape_cast %26 : vector<1x1x128xf32> to vector<1x128xf32>
    %28 = vector.broadcast %27 : vector<1x128xf32> to vector<64x128xf32>
    %29 = arith.addf %25, %28 : vector<64x128xf32>
    %30 = vector.shape_cast %29 : vector<64x128xf32> to vector<8x8x128xf32>
    %c0_27 = arith.constant 0 : index
    %c0_28 = arith.constant 0 : index
    %c0_29 = arith.constant 0 : index
    %31 = vector.load %arg13[%c0_27, %c0_28, %c0_29] : memref<8x8x128xf32, #tpu.memory_space<vmem>>, vector<8x8x128xf32>
    tpu.vector_store %arg13[%c0_27, %c0_28, %c0_29], %30 {strides = array<i32>} : memref<8x8x128xf32, #tpu.memory_space<vmem>>, vector<8x8x128xf32>,
    %c0_30 = arith.constant 0 : index
    %c0_31 = arith.constant 0 : index
    %c0_32 = arith.constant 0 : index
    %32 = vector.load %arg5[%c0_30, %c0_31, %c0_32] : memref<3x128x128xf32, #tpu.memory_space<vmem>>, vector<1x128x128xf32>
    %33 = vector.shape_cast %32 : vector<1x128x128xf32> to vector<128x128xf32>
    %c1_33 = arith.constant 1 : index
    %c0_34 = arith.constant 0 : index
    %c0_35 = arith.constant 0 : index
    %34 = vector.load %arg5[%c1_33, %c0_34, %c0_35] : memref<3x128x128xf32, #tpu.memory_space<vmem>>, vector<1x128x128xf32>
    %35 = vector.shape_cast %34 : vector<1x128x128xf32> to vector<128x128xf32>
    %c2_36 = arith.constant 2 : index
    %c0_37 = arith.constant 0 : index
    %c0_38 = arith.constant 0 : index
    %36 = vector.load %arg5[%c2_36, %c0_37, %c0_38] : memref<3x128x128xf32, #tpu.memory_space<vmem>>, vector<1x128x128xf32>
    %37 = vector.shape_cast %36 : vector<1x128x128xf32> to vector<128x128xf32>
    %c0_39 = arith.constant 0 : index
    %c0_40 = arith.constant 0 : index
    %38 = vector.load %arg7[%c0_39, %c0_40] : memref<1x128xf32, #tpu.memory_space<vmem>>, vector<1x128xf32>
    %c0_41 = arith.constant 0 : index
    %c0_42 = arith.constant 0 : index
    %39 = vector.load %arg3[%c0_41, %c0_42] : memref<8x1xi32, #tpu.memory_space<vmem>>, vector<8x1xi32>
    %c8_i32 = arith.constant 8 : i32
    %40 = arith.muli %arg1, %c8_i32 : i32
    %c0_43 = arith.constant 0 : index
    %c0_44 = arith.constant 0 : index
    %41 = vector.load %arg10[%c0_43, %c0_44] : memref<8x128xf32, #tpu.memory_space<vmem>>, vector<8x128xf32>
    %c0_i32_45 = arith.constant 0 : i32
    %cst_46 = arith.constant dense<0.000000e+00> : vector<8x128xf32>
    %42 = tpu.matmul %41, %33, %cst_46 {dimension_numbers = #tpu.dot_dimension_numbers<[1], [0], [0], [1], [0, 0, 1, 1], [], []>} : vector<8x128xf32>, vector<128x128xf32>, vector<8x128xf32> -> vector<8x128xf32>
    %cst_47 = arith.constant dense<0.000000e+00> : vector<8x128xf32>
    %43 = tpu.matmul %41, %35, %cst_47 {dimension_numbers = #tpu.dot_dimension_numbers<[1], [0], [0], [1], [0, 0, 1, 1], [], []>} : vector<8x128xf32>, vector<128x128xf32>, vector<8x128xf32> -> vector<8x128xf32>
    %cst_48 = arith.constant dense<0.000000e+00> : vector<8x128xf32>
    %44 = tpu.matmul %41, %37, %cst_48 {dimension_numbers = #tpu.dot_dimension_numbers<[1], [0], [0], [1], [0, 0, 1, 1], [], []>} : vector<8x128xf32>, vector<128x128xf32>, vector<8x128xf32> -> vector<8x128xf32>
    %45 = arith.index_cast %c0_i32_45 : i32 to index
    %c0_49 = arith.constant 0 : index
    %c0_50 = arith.constant 0 : index
    %46 = vector.load %arg11[%45, %c0_49, %c0_50] : memref<8x8x128xf32, #tpu.memory_space<vmem>>, vector<1x8x128xf32>
    %47 = vector.shape_cast %46 : vector<1x8x128xf32> to vector<8x128xf32>
    %48 = arith.addf %47, %42 : vector<8x128xf32>
    %49 = arith.negf %48 : vector<8x128xf32>
    %50 = math.exp %49 : vector<8x128xf32>
    %cst_51 = arith.constant 1.000000e+00 : f32
    %51 = vector.broadcast %cst_51 : f32 to vector<8x128xf32>
    %52 = arith.addf %51, %50 : vector<8x128xf32>
    %53 = arith.divf %51, %52 : vector<8x128xf32>
    %54 = arith.index_cast %c0_i32_45 : i32 to index
    %c0_52 = arith.constant 0 : index
    %c0_53 = arith.constant 0 : index
    %55 = vector.load %arg12[%54, %c0_52, %c0_53] : memref<8x8x128xf32, #tpu.memory_space<vmem>>, vector<1x8x128xf32>
    %56 = vector.shape_cast %55 : vector<1x8x128xf32> to vector<8x128xf32>
    %57 = arith.addf %56, %43 : vector<8x128xf32>
    %58 = arith.negf %57 : vector<8x128xf32>
    %59 = math.exp %58 : vector<8x128xf32>
    %cst_54 = arith.constant 1.000000e+00 : f32
    %60 = vector.broadcast %cst_54 : f32 to vector<8x128xf32>
    %61 = arith.addf %60, %59 : vector<8x128xf32>
    %62 = arith.divf %60, %61 : vector<8x128xf32>
    %63 = arith.index_cast %c0_i32_45 : i32 to index
    %c0_55 = arith.constant 0 : index
    %c0_56 = arith.constant 0 : index
    %64 = vector.load %arg13[%63, %c0_55, %c0_56] : memref<8x8x128xf32, #tpu.memory_space<vmem>>, vector<1x8x128xf32>
    %65 = vector.shape_cast %64 : vector<1x8x128xf32> to vector<8x128xf32>
    %66 = vector.broadcast %38 : vector<1x128xf32> to vector<8x128xf32>
    %67 = arith.addf %44, %66 : vector<8x128xf32>
    %68 = arith.mulf %53, %67 : vector<8x128xf32>
    %69 = arith.addf %65, %68 : vector<8x128xf32>
    %70 = math.tanh %69 : vector<8x128xf32>
    %cst_57 = arith.constant 1.000000e+00 : f32
    %71 = vector.broadcast %cst_57 : f32 to vector<8x128xf32>
    %72 = arith.subf %71, %62 : vector<8x128xf32>
    %73 = arith.mulf %72, %70 : vector<8x128xf32>
    %74 = arith.mulf %62, %41 : vector<8x128xf32>
    %75 = arith.addf %73, %74 : vector<8x128xf32>
    %76 = arith.addi %40, %c0_i32_45 : i32
    %77 = vector.broadcast %76 : i32 to vector<8x1xi32>
    %78 = arith.cmpi sgt, %39, %77 : vector<8x1xi32>
    %cst_58 = arith.constant 0.000000e+00 : f32
    %79 = vector.shape_cast %78 : vector<8x1xi1> to vector<8x1xi1>
    %80 = vector.broadcast %79 : vector<8x1xi1> to vector<8x128xi1>
    %81 = vector.broadcast %cst_58 : f32 to vector<8x128xf32>
    %82 = arith.select %80, %75, %81 : vector<8x128xi1>, vector<8x128xf32>
    %83 = arith.index_cast %c0_i32_45 : i32 to index
    %c0_59 = arith.constant 0 : index
    %c0_60 = arith.constant 0 : index
    %84 = vector.load %arg8[%83, %c0_59, %c0_60] : memref<8x8x128xf32, #tpu.memory_space<vmem>>, vector<1x8x128xf32>
    %85 = vector.shape_cast %84 : vector<1x8x128xf32> to vector<8x128xf32>
    %86 = vector.shape_cast %82 : vector<8x128xf32> to vector<1x8x128xf32>
    tpu.vector_store %arg8[%83, %c0_59, %c0_60], %86 {strides = array<i32>} : memref<8x8x128xf32, #tpu.memory_space<vmem>>, vector<1x8x128xf32>,
    %87 = vector.shape_cast %78 : vector<8x1xi1> to vector<8x1xi1>
    %88 = vector.broadcast %87 : vector<8x1xi1> to vector<8x128xi1>
    %89 = arith.select %88, %75, %41 : vector<8x128xi1>, vector<8x128xf32>
    %c1_i32 = arith.constant 1 : i32
    %cst_61 = arith.constant dense<0.000000e+00> : vector<8x128xf32>
    %90 = tpu.matmul %89, %33, %cst_61 {dimension_numbers = #tpu.dot_dimension_numbers<[1], [0], [0], [1], [0, 0, 1, 1], [], []>} : vector<8x128xf32>, vector<128x128xf32>, vector<8x128xf32> -> vector<8x128xf32>
    %cst_62 = arith.constant dense<0.000000e+00> : vector<8x128xf32>
    %91 = tpu.matmul %89, %35, %cst_62 {dimension_numbers = #tpu.dot_dimension_numbers<[1], [0], [0], [1], [0, 0, 1, 1], [], []>} : vector<8x128xf32>, vector<128x128xf32>, vector<8x128xf32> -> vector<8x128xf32>
    %cst_63 = arith.constant dense<0.000000e+00> : vector<8x128xf32>
    %92 = tpu.matmul %89, %37, %cst_63 {dimension_numbers = #tpu.dot_dimension_numbers<[1], [0], [0], [1], [0, 0, 1, 1], [], []>} : vector<8x128xf32>, vector<128x128xf32>, vector<8x128xf32> -> vector<8x128xf32>
    %93 = arith.index_cast %c1_i32 : i32 to index
    %c0_64 = arith.constant 0 : index
    %c0_65 = arith.constant 0 : index
    %94 = vector.load %arg11[%93, %c0_64, %c0_65] : memref<8x8x128xf32, #tpu.memory_space<vmem>>, vector<1x8x128xf32>
    %95 = vector.shape_cast %94 : vector<1x8x128xf32> to vector<8x128xf32>
    %96 = arith.addf %95, %90 : vector<8x128xf32>
    %97 = arith.negf %96 : vector<8x128xf32>
    %98 = math.exp %97 : vector<8x128xf32>
    %cst_66 = arith.constant 1.000000e+00 : f32
    %99 = vector.broadcast %cst_66 : f32 to vector<8x128xf32>
    %100 = arith.addf %99, %98 : vector<8x128xf32>
    %101 = arith.divf %99, %100 : vector<8x128xf32>
    %102 = arith.index_cast %c1_i32 : i32 to index
    %c0_67 = arith.constant 0 : index
    %c0_68 = arith.constant 0 : index
    %103 = vector.load %arg12[%102, %c0_67, %c0_68] : memref<8x8x128xf32, #tpu.memory_space<vmem>>, vector<1x8x128xf32>
    %104 = vector.shape_cast %103 : vector<1x8x128xf32> to vector<8x128xf32>
    %105 = arith.addf %104, %91 : vector<8x128xf32>
    %106 = arith.negf %105 : vector<8x128xf32>
    %107 = math.exp %106 : vector<8x128xf32>
    %cst_69 = arith.constant 1.000000e+00 : f32
    %108 = vector.broadcast %cst_69 : f32 to vector<8x128xf32>
    %109 = arith.addf %108, %107 : vector<8x128xf32>
    %110 = arith.divf %108, %109 : vector<8x128xf32>
    %111 = arith.index_cast %c1_i32 : i32 to index
    %c0_70 = arith.constant 0 : index
    %c0_71 = arith.constant 0 : index
    %112 = vector.load %arg13[%111, %c0_70, %c0_71] : memref<8x8x128xf32, #tpu.memory_space<vmem>>, vector<1x8x128xf32>
    %113 = vector.shape_cast %112 : vector<1x8x128xf32> to vector<8x128xf32>
    %114 = vector.broadcast %38 : vector<1x128xf32> to vector<8x128xf32>
    %115 = arith.addf %92, %114 : vector<8x128xf32>
    %116 = arith.mulf %101, %115 : vector<8x128xf32>
    %117 = arith.addf %113, %116 : vector<8x128xf32>
    %118 = math.tanh %117 : vector<8x128xf32>
    %cst_72 = arith.constant 1.000000e+00 : f32
    %119 = vector.broadcast %cst_72 : f32 to vector<8x128xf32>
    %120 = arith.subf %119, %110 : vector<8x128xf32>
    %121 = arith.mulf %120, %118 : vector<8x128xf32>
    %122 = arith.mulf %110, %89 : vector<8x128xf32>
    %123 = arith.addf %121, %122 : vector<8x128xf32>
    %124 = arith.addi %40, %c1_i32 : i32
    %125 = vector.broadcast %124 : i32 to vector<8x1xi32>
    %126 = arith.cmpi sgt, %39, %125 : vector<8x1xi32>
    %cst_73 = arith.constant 0.000000e+00 : f32
    %127 = vector.shape_cast %126 : vector<8x1xi1> to vector<8x1xi1>
    %128 = vector.broadcast %127 : vector<8x1xi1> to vector<8x128xi1>
    %129 = vector.broadcast %cst_73 : f32 to vector<8x128xf32>
    %130 = arith.select %128, %123, %129 : vector<8x128xi1>, vector<8x128xf32>
    %131 = arith.index_cast %c1_i32 : i32 to index
    %c0_74 = arith.constant 0 : index
    %c0_75 = arith.constant 0 : index
    %132 = vector.load %arg8[%131, %c0_74, %c0_75] : memref<8x8x128xf32, #tpu.memory_space<vmem>>, vector<1x8x128xf32>
    %133 = vector.shape_cast %132 : vector<1x8x128xf32> to vector<8x128xf32>
    %134 = vector.shape_cast %130 : vector<8x128xf32> to vector<1x8x128xf32>
    tpu.vector_store %arg8[%131, %c0_74, %c0_75], %134 {strides = array<i32>} : memref<8x8x128xf32, #tpu.memory_space<vmem>>, vector<1x8x128xf32>,
    %135 = vector.shape_cast %126 : vector<8x1xi1> to vector<8x1xi1>
    %136 = vector.broadcast %135 : vector<8x1xi1> to vector<8x128xi1>
    %137 = arith.select %136, %123, %89 : vector<8x128xi1>, vector<8x128xf32>
    %c2_i32 = arith.constant 2 : i32
    %cst_76 = arith.constant dense<0.000000e+00> : vector<8x128xf32>
    %138 = tpu.matmul %137, %33, %cst_76 {dimension_numbers = #tpu.dot_dimension_numbers<[1], [0], [0], [1], [0, 0, 1, 1], [], []>} : vector<8x128xf32>, vector<128x128xf32>, vector<8x128xf32> -> vector<8x128xf32>
    %cst_77 = arith.constant dense<0.000000e+00> : vector<8x128xf32>
    %139 = tpu.matmul %137, %35, %cst_77 {dimension_numbers = #tpu.dot_dimension_numbers<[1], [0], [0], [1], [0, 0, 1, 1], [], []>} : vector<8x128xf32>, vector<128x128xf32>, vector<8x128xf32> -> vector<8x128xf32>
    %cst_78 = arith.constant dense<0.000000e+00> : vector<8x128xf32>
    %140 = tpu.matmul %137, %37, %cst_78 {dimension_numbers = #tpu.dot_dimension_numbers<[1], [0], [0], [1], [0, 0, 1, 1], [], []>} : vector<8x128xf32>, vector<128x128xf32>, vector<8x128xf32> -> vector<8x128xf32>
    %141 = arith.index_cast %c2_i32 : i32 to index
    %c0_79 = arith.constant 0 : index
    %c0_80 = arith.constant 0 : index
    %142 = vector.load %arg11[%141, %c0_79, %c0_80] : memref<8x8x128xf32, #tpu.memory_space<vmem>>, vector<1x8x128xf32>
    %143 = vector.shape_cast %142 : vector<1x8x128xf32> to vector<8x128xf32>
    %144 = arith.addf %143, %138 : vector<8x128xf32>
    %145 = arith.negf %144 : vector<8x128xf32>
    %146 = math.exp %145 : vector<8x128xf32>
    %cst_81 = arith.constant 1.000000e+00 : f32
    %147 = vector.broadcast %cst_81 : f32 to vector<8x128xf32>
    %148 = arith.addf %147, %146 : vector<8x128xf32>
    %149 = arith.divf %147, %148 : vector<8x128xf32>
    %150 = arith.index_cast %c2_i32 : i32 to index
    %c0_82 = arith.constant 0 : index
    %c0_83 = arith.constant 0 : index
    %151 = vector.load %arg12[%150, %c0_82, %c0_83] : memref<8x8x128xf32, #tpu.memory_space<vmem>>, vector<1x8x128xf32>
    %152 = vector.shape_cast %151 : vector<1x8x128xf32> to vector<8x128xf32>
    %153 = arith.addf %152, %139 : vector<8x128xf32>
    %154 = arith.negf %153 : vector<8x128xf32>
    %155 = math.exp %154 : vector<8x128xf32>
    %cst_84 = arith.constant 1.000000e+00 : f32
    %156 = vector.broadcast %cst_84 : f32 to vector<8x128xf32>
    %157 = arith.addf %156, %155 : vector<8x128xf32>
    %158 = arith.divf %156, %157 : vector<8x128xf32>
    %159 = arith.index_cast %c2_i32 : i32 to index
    %c0_85 = arith.constant 0 : index
    %c0_86 = arith.constant 0 : index
    %160 = vector.load %arg13[%159, %c0_85, %c0_86] : memref<8x8x128xf32, #tpu.memory_space<vmem>>, vector<1x8x128xf32>
    %161 = vector.shape_cast %160 : vector<1x8x128xf32> to vector<8x128xf32>
    %162 = vector.broadcast %38 : vector<1x128xf32> to vector<8x128xf32>
    %163 = arith.addf %140, %162 : vector<8x128xf32>
    %164 = arith.mulf %149, %163 : vector<8x128xf32>
    %165 = arith.addf %161, %164 : vector<8x128xf32>
    %166 = math.tanh %165 : vector<8x128xf32>
    %cst_87 = arith.constant 1.000000e+00 : f32
    %167 = vector.broadcast %cst_87 : f32 to vector<8x128xf32>
    %168 = arith.subf %167, %158 : vector<8x128xf32>
    %169 = arith.mulf %168, %166 : vector<8x128xf32>
    %170 = arith.mulf %158, %137 : vector<8x128xf32>
    %171 = arith.addf %169, %170 : vector<8x128xf32>
    %172 = arith.addi %40, %c2_i32 : i32
    %173 = vector.broadcast %172 : i32 to vector<8x1xi32>
    %174 = arith.cmpi sgt, %39, %173 : vector<8x1xi32>
    %cst_88 = arith.constant 0.000000e+00 : f32
    %175 = vector.shape_cast %174 : vector<8x1xi1> to vector<8x1xi1>
    %176 = vector.broadcast %175 : vector<8x1xi1> to vector<8x128xi1>
    %177 = vector.broadcast %cst_88 : f32 to vector<8x128xf32>
    %178 = arith.select %176, %171, %177 : vector<8x128xi1>, vector<8x128xf32>
    %179 = arith.index_cast %c2_i32 : i32 to index
    %c0_89 = arith.constant 0 : index
    %c0_90 = arith.constant 0 : index
    %180 = vector.load %arg8[%179, %c0_89, %c0_90] : memref<8x8x128xf32, #tpu.memory_space<vmem>>, vector<1x8x128xf32>
    %181 = vector.shape_cast %180 : vector<1x8x128xf32> to vector<8x128xf32>
    %182 = vector.shape_cast %178 : vector<8x128xf32> to vector<1x8x128xf32>
    tpu.vector_store %arg8[%179, %c0_89, %c0_90], %182 {strides = array<i32>} : memref<8x8x128xf32, #tpu.memory_space<vmem>>, vector<1x8x128xf32>,
    %183 = vector.shape_cast %174 : vector<8x1xi1> to vector<8x1xi1>
    %184 = vector.broadcast %183 : vector<8x1xi1> to vector<8x128xi1>
    %185 = arith.select %184, %171, %137 : vector<8x128xi1>, vector<8x128xf32>
    %c3_i32 = arith.constant 3 : i32
    %cst_91 = arith.constant dense<0.000000e+00> : vector<8x128xf32>
    %186 = tpu.matmul %185, %33, %cst_91 {dimension_numbers = #tpu.dot_dimension_numbers<[1], [0], [0], [1], [0, 0, 1, 1], [], []>} : vector<8x128xf32>, vector<128x128xf32>, vector<8x128xf32> -> vector<8x128xf32>
    %cst_92 = arith.constant dense<0.000000e+00> : vector<8x128xf32>
    %187 = tpu.matmul %185, %35, %cst_92 {dimension_numbers = #tpu.dot_dimension_numbers<[1], [0], [0], [1], [0, 0, 1, 1], [], []>} : vector<8x128xf32>, vector<128x128xf32>, vector<8x128xf32> -> vector<8x128xf32>
    %cst_93 = arith.constant dense<0.000000e+00> : vector<8x128xf32>
    %188 = tpu.matmul %185, %37, %cst_93 {dimension_numbers = #tpu.dot_dimension_numbers<[1], [0], [0], [1], [0, 0, 1, 1], [], []>} : vector<8x128xf32>, vector<128x128xf32>, vector<8x128xf32> -> vector<8x128xf32>
    %189 = arith.index_cast %c3_i32 : i32 to index
    %c0_94 = arith.constant 0 : index
    %c0_95 = arith.constant 0 : index
    %190 = vector.load %arg11[%189, %c0_94, %c0_95] : memref<8x8x128xf32, #tpu.memory_space<vmem>>, vector<1x8x128xf32>
    %191 = vector.shape_cast %190 : vector<1x8x128xf32> to vector<8x128xf32>
    %192 = arith.addf %191, %186 : vector<8x128xf32>
    %193 = arith.negf %192 : vector<8x128xf32>
    %194 = math.exp %193 : vector<8x128xf32>
    %cst_96 = arith.constant 1.000000e+00 : f32
    %195 = vector.broadcast %cst_96 : f32 to vector<8x128xf32>
    %196 = arith.addf %195, %194 : vector<8x128xf32>
    %197 = arith.divf %195, %196 : vector<8x128xf32>
    %198 = arith.index_cast %c3_i32 : i32 to index
    %c0_97 = arith.constant 0 : index
    %c0_98 = arith.constant 0 : index
    %199 = vector.load %arg12[%198, %c0_97, %c0_98] : memref<8x8x128xf32, #tpu.memory_space<vmem>>, vector<1x8x128xf32>
    %200 = vector.shape_cast %199 : vector<1x8x128xf32> to vector<8x128xf32>
    %201 = arith.addf %200, %187 : vector<8x128xf32>
    %202 = arith.negf %201 : vector<8x128xf32>
    %203 = math.exp %202 : vector<8x128xf32>
    %cst_99 = arith.constant 1.000000e+00 : f32
    %204 = vector.broadcast %cst_99 : f32 to vector<8x128xf32>
    %205 = arith.addf %204, %203 : vector<8x128xf32>
    %206 = arith.divf %204, %205 : vector<8x128xf32>
    %207 = arith.index_cast %c3_i32 : i32 to index
    %c0_100 = arith.constant 0 : index
    %c0_101 = arith.constant 0 : index
    %208 = vector.load %arg13[%207, %c0_100, %c0_101] : memref<8x8x128xf32, #tpu.memory_space<vmem>>, vector<1x8x128xf32>
    %209 = vector.shape_cast %208 : vector<1x8x128xf32> to vector<8x128xf32>
    %210 = vector.broadcast %38 : vector<1x128xf32> to vector<8x128xf32>
    %211 = arith.addf %188, %210 : vector<8x128xf32>
    %212 = arith.mulf %197, %211 : vector<8x128xf32>
    %213 = arith.addf %209, %212 : vector<8x128xf32>
    %214 = math.tanh %213 : vector<8x128xf32>
    %cst_102 = arith.constant 1.000000e+00 : f32
    %215 = vector.broadcast %cst_102 : f32 to vector<8x128xf32>
    %216 = arith.subf %215, %206 : vector<8x128xf32>
    %217 = arith.mulf %216, %214 : vector<8x128xf32>
    %218 = arith.mulf %206, %185 : vector<8x128xf32>
    %219 = arith.addf %217, %218 : vector<8x128xf32>
    %220 = arith.addi %40, %c3_i32 : i32
    %221 = vector.broadcast %220 : i32 to vector<8x1xi32>
    %222 = arith.cmpi sgt, %39, %221 : vector<8x1xi32>
    %cst_103 = arith.constant 0.000000e+00 : f32
    %223 = vector.shape_cast %222 : vector<8x1xi1> to vector<8x1xi1>
    %224 = vector.broadcast %223 : vector<8x1xi1> to vector<8x128xi1>
    %225 = vector.broadcast %cst_103 : f32 to vector<8x128xf32>
    %226 = arith.select %224, %219, %225 : vector<8x128xi1>, vector<8x128xf32>
    %227 = arith.index_cast %c3_i32 : i32 to index
    %c0_104 = arith.constant 0 : index
    %c0_105 = arith.constant 0 : index
    %228 = vector.load %arg8[%227, %c0_104, %c0_105] : memref<8x8x128xf32, #tpu.memory_space<vmem>>, vector<1x8x128xf32>
    %229 = vector.shape_cast %228 : vector<1x8x128xf32> to vector<8x128xf32>
    %230 = vector.shape_cast %226 : vector<8x128xf32> to vector<1x8x128xf32>
    tpu.vector_store %arg8[%227, %c0_104, %c0_105], %230 {strides = array<i32>} : memref<8x8x128xf32, #tpu.memory_space<vmem>>, vector<1x8x128xf32>,
    %231 = vector.shape_cast %222 : vector<8x1xi1> to vector<8x1xi1>
    %232 = vector.broadcast %231 : vector<8x1xi1> to vector<8x128xi1>
    %233 = arith.select %232, %219, %185 : vector<8x128xi1>, vector<8x128xf32>
    %c4_i32 = arith.constant 4 : i32
    %cst_106 = arith.constant dense<0.000000e+00> : vector<8x128xf32>
    %234 = tpu.matmul %233, %33, %cst_106 {dimension_numbers = #tpu.dot_dimension_numbers<[1], [0], [0], [1], [0, 0, 1, 1], [], []>} : vector<8x128xf32>, vector<128x128xf32>, vector<8x128xf32> -> vector<8x128xf32>
    %cst_107 = arith.constant dense<0.000000e+00> : vector<8x128xf32>
    %235 = tpu.matmul %233, %35, %cst_107 {dimension_numbers = #tpu.dot_dimension_numbers<[1], [0], [0], [1], [0, 0, 1, 1], [], []>} : vector<8x128xf32>, vector<128x128xf32>, vector<8x128xf32> -> vector<8x128xf32>
    %cst_108 = arith.constant dense<0.000000e+00> : vector<8x128xf32>
    %236 = tpu.matmul %233, %37, %cst_108 {dimension_numbers = #tpu.dot_dimension_numbers<[1], [0], [0], [1], [0, 0, 1, 1], [], []>} : vector<8x128xf32>, vector<128x128xf32>, vector<8x128xf32> -> vector<8x128xf32>
    %237 = arith.index_cast %c4_i32 : i32 to index
    %c0_109 = arith.constant 0 : index
    %c0_110 = arith.constant 0 : index
    %238 = vector.load %arg11[%237, %c0_109, %c0_110] : memref<8x8x128xf32, #tpu.memory_space<vmem>>, vector<1x8x128xf32>
    %239 = vector.shape_cast %238 : vector<1x8x128xf32> to vector<8x128xf32>
    %240 = arith.addf %239, %234 : vector<8x128xf32>
    %241 = arith.negf %240 : vector<8x128xf32>
    %242 = math.exp %241 : vector<8x128xf32>
    %cst_111 = arith.constant 1.000000e+00 : f32
    %243 = vector.broadcast %cst_111 : f32 to vector<8x128xf32>
    %244 = arith.addf %243, %242 : vector<8x128xf32>
    %245 = arith.divf %243, %244 : vector<8x128xf32>
    %246 = arith.index_cast %c4_i32 : i32 to index
    %c0_112 = arith.constant 0 : index
    %c0_113 = arith.constant 0 : index
    %247 = vector.load %arg12[%246, %c0_112, %c0_113] : memref<8x8x128xf32, #tpu.memory_space<vmem>>, vector<1x8x128xf32>
    %248 = vector.shape_cast %247 : vector<1x8x128xf32> to vector<8x128xf32>
    %249 = arith.addf %248, %235 : vector<8x128xf32>
    %250 = arith.negf %249 : vector<8x128xf32>
    %251 = math.exp %250 : vector<8x128xf32>
    %cst_114 = arith.constant 1.000000e+00 : f32
    %252 = vector.broadcast %cst_114 : f32 to vector<8x128xf32>
    %253 = arith.addf %252, %251 : vector<8x128xf32>
    %254 = arith.divf %252, %253 : vector<8x128xf32>
    %255 = arith.index_cast %c4_i32 : i32 to index
    %c0_115 = arith.constant 0 : index
    %c0_116 = arith.constant 0 : index
    %256 = vector.load %arg13[%255, %c0_115, %c0_116] : memref<8x8x128xf32, #tpu.memory_space<vmem>>, vector<1x8x128xf32>
    %257 = vector.shape_cast %256 : vector<1x8x128xf32> to vector<8x128xf32>
    %258 = vector.broadcast %38 : vector<1x128xf32> to vector<8x128xf32>
    %259 = arith.addf %236, %258 : vector<8x128xf32>
    %260 = arith.mulf %245, %259 : vector<8x128xf32>
    %261 = arith.addf %257, %260 : vector<8x128xf32>
    %262 = math.tanh %261 : vector<8x128xf32>
    %cst_117 = arith.constant 1.000000e+00 : f32
    %263 = vector.broadcast %cst_117 : f32 to vector<8x128xf32>
    %264 = arith.subf %263, %254 : vector<8x128xf32>
    %265 = arith.mulf %264, %262 : vector<8x128xf32>
    %266 = arith.mulf %254, %233 : vector<8x128xf32>
    %267 = arith.addf %265, %266 : vector<8x128xf32>
    %268 = arith.addi %40, %c4_i32 : i32
    %269 = vector.broadcast %268 : i32 to vector<8x1xi32>
    %270 = arith.cmpi sgt, %39, %269 : vector<8x1xi32>
    %cst_118 = arith.constant 0.000000e+00 : f32
    %271 = vector.shape_cast %270 : vector<8x1xi1> to vector<8x1xi1>
    %272 = vector.broadcast %271 : vector<8x1xi1> to vector<8x128xi1>
    %273 = vector.broadcast %cst_118 : f32 to vector<8x128xf32>
    %274 = arith.select %272, %267, %273 : vector<8x128xi1>, vector<8x128xf32>
    %275 = arith.index_cast %c4_i32 : i32 to index
    %c0_119 = arith.constant 0 : index
    %c0_120 = arith.constant 0 : index
    %276 = vector.load %arg8[%275, %c0_119, %c0_120] : memref<8x8x128xf32, #tpu.memory_space<vmem>>, vector<1x8x128xf32>
    %277 = vector.shape_cast %276 : vector<1x8x128xf32> to vector<8x128xf32>
    %278 = vector.shape_cast %274 : vector<8x128xf32> to vector<1x8x128xf32>
    tpu.vector_store %arg8[%275, %c0_119, %c0_120], %278 {strides = array<i32>} : memref<8x8x128xf32, #tpu.memory_space<vmem>>, vector<1x8x128xf32>,
    %279 = vector.shape_cast %270 : vector<8x1xi1> to vector<8x1xi1>
    %280 = vector.broadcast %279 : vector<8x1xi1> to vector<8x128xi1>
    %281 = arith.select %280, %267, %233 : vector<8x128xi1>, vector<8x128xf32>
    %c5_i32 = arith.constant 5 : i32
    %cst_121 = arith.constant dense<0.000000e+00> : vector<8x128xf32>
    %282 = tpu.matmul %281, %33, %cst_121 {dimension_numbers = #tpu.dot_dimension_numbers<[1], [0], [0], [1], [0, 0, 1, 1], [], []>} : vector<8x128xf32>, vector<128x128xf32>, vector<8x128xf32> -> vector<8x128xf32>
    %cst_122 = arith.constant dense<0.000000e+00> : vector<8x128xf32>
    %283 = tpu.matmul %281, %35, %cst_122 {dimension_numbers = #tpu.dot_dimension_numbers<[1], [0], [0], [1], [0, 0, 1, 1], [], []>} : vector<8x128xf32>, vector<128x128xf32>, vector<8x128xf32> -> vector<8x128xf32>
    %cst_123 = arith.constant dense<0.000000e+00> : vector<8x128xf32>
    %284 = tpu.matmul %281, %37, %cst_123 {dimension_numbers = #tpu.dot_dimension_numbers<[1], [0], [0], [1], [0, 0, 1, 1], [], []>} : vector<8x128xf32>, vector<128x128xf32>, vector<8x128xf32> -> vector<8x128xf32>
    %285 = arith.index_cast %c5_i32 : i32 to index
    %c0_124 = arith.constant 0 : index
    %c0_125 = arith.constant 0 : index
    %286 = vector.load %arg11[%285, %c0_124, %c0_125] : memref<8x8x128xf32, #tpu.memory_space<vmem>>, vector<1x8x128xf32>
    %287 = vector.shape_cast %286 : vector<1x8x128xf32> to vector<8x128xf32>
    %288 = arith.addf %287, %282 : vector<8x128xf32>
    %289 = arith.negf %288 : vector<8x128xf32>
    %290 = math.exp %289 : vector<8x128xf32>
    %cst_126 = arith.constant 1.000000e+00 : f32
    %291 = vector.broadcast %cst_126 : f32 to vector<8x128xf32>
    %292 = arith.addf %291, %290 : vector<8x128xf32>
    %293 = arith.divf %291, %292 : vector<8x128xf32>
    %294 = arith.index_cast %c5_i32 : i32 to index
    %c0_127 = arith.constant 0 : index
    %c0_128 = arith.constant 0 : index
    %295 = vector.load %arg12[%294, %c0_127, %c0_128] : memref<8x8x128xf32, #tpu.memory_space<vmem>>, vector<1x8x128xf32>
    %296 = vector.shape_cast %295 : vector<1x8x128xf32> to vector<8x128xf32>
    %297 = arith.addf %296, %283 : vector<8x128xf32>
    %298 = arith.negf %297 : vector<8x128xf32>
    %299 = math.exp %298 : vector<8x128xf32>
    %cst_129 = arith.constant 1.000000e+00 : f32
    %300 = vector.broadcast %cst_129 : f32 to vector<8x128xf32>
    %301 = arith.addf %300, %299 : vector<8x128xf32>
    %302 = arith.divf %300, %301 : vector<8x128xf32>
    %303 = arith.index_cast %c5_i32 : i32 to index
    %c0_130 = arith.constant 0 : index
    %c0_131 = arith.constant 0 : index
    %304 = vector.load %arg13[%303, %c0_130, %c0_131] : memref<8x8x128xf32, #tpu.memory_space<vmem>>, vector<1x8x128xf32>
    %305 = vector.shape_cast %304 : vector<1x8x128xf32> to vector<8x128xf32>
    %306 = vector.broadcast %38 : vector<1x128xf32> to vector<8x128xf32>
    %307 = arith.addf %284, %306 : vector<8x128xf32>
    %308 = arith.mulf %293, %307 : vector<8x128xf32>
    %309 = arith.addf %305, %308 : vector<8x128xf32>
    %310 = math.tanh %309 : vector<8x128xf32>
    %cst_132 = arith.constant 1.000000e+00 : f32
    %311 = vector.broadcast %cst_132 : f32 to vector<8x128xf32>
    %312 = arith.subf %311, %302 : vector<8x128xf32>
    %313 = arith.mulf %312, %310 : vector<8x128xf32>
    %314 = arith.mulf %302, %281 : vector<8x128xf32>
    %315 = arith.addf %313, %314 : vector<8x128xf32>
    %316 = arith.addi %40, %c5_i32 : i32
    %317 = vector.broadcast %316 : i32 to vector<8x1xi32>
    %318 = arith.cmpi sgt, %39, %317 : vector<8x1xi32>
    %cst_133 = arith.constant 0.000000e+00 : f32
    %319 = vector.shape_cast %318 : vector<8x1xi1> to vector<8x1xi1>
    %320 = vector.broadcast %319 : vector<8x1xi1> to vector<8x128xi1>
    %321 = vector.broadcast %cst_133 : f32 to vector<8x128xf32>
    %322 = arith.select %320, %315, %321 : vector<8x128xi1>, vector<8x128xf32>
    %323 = arith.index_cast %c5_i32 : i32 to index
    %c0_134 = arith.constant 0 : index
    %c0_135 = arith.constant 0 : index
    %324 = vector.load %arg8[%323, %c0_134, %c0_135] : memref<8x8x128xf32, #tpu.memory_space<vmem>>, vector<1x8x128xf32>
    %325 = vector.shape_cast %324 : vector<1x8x128xf32> to vector<8x128xf32>
    %326 = vector.shape_cast %322 : vector<8x128xf32> to vector<1x8x128xf32>
    tpu.vector_store %arg8[%323, %c0_134, %c0_135], %326 {strides = array<i32>} : memref<8x8x128xf32, #tpu.memory_space<vmem>>, vector<1x8x128xf32>,
    %327 = vector.shape_cast %318 : vector<8x1xi1> to vector<8x1xi1>
    %328 = vector.broadcast %327 : vector<8x1xi1> to vector<8x128xi1>
    %329 = arith.select %328, %315, %281 : vector<8x128xi1>, vector<8x128xf32>
    %c6_i32 = arith.constant 6 : i32
    %cst_136 = arith.constant dense<0.000000e+00> : vector<8x128xf32>
    %330 = tpu.matmul %329, %33, %cst_136 {dimension_numbers = #tpu.dot_dimension_numbers<[1], [0], [0], [1], [0, 0, 1, 1], [], []>} : vector<8x128xf32>, vector<128x128xf32>, vector<8x128xf32> -> vector<8x128xf32>
    %cst_137 = arith.constant dense<0.000000e+00> : vector<8x128xf32>
    %331 = tpu.matmul %329, %35, %cst_137 {dimension_numbers = #tpu.dot_dimension_numbers<[1], [0], [0], [1], [0, 0, 1, 1], [], []>} : vector<8x128xf32>, vector<128x128xf32>, vector<8x128xf32> -> vector<8x128xf32>
    %cst_138 = arith.constant dense<0.000000e+00> : vector<8x128xf32>
    %332 = tpu.matmul %329, %37, %cst_138 {dimension_numbers = #tpu.dot_dimension_numbers<[1], [0], [0], [1], [0, 0, 1, 1], [], []>} : vector<8x128xf32>, vector<128x128xf32>, vector<8x128xf32> -> vector<8x128xf32>
    %333 = arith.index_cast %c6_i32 : i32 to index
    %c0_139 = arith.constant 0 : index
    %c0_140 = arith.constant 0 : index
    %334 = vector.load %arg11[%333, %c0_139, %c0_140] : memref<8x8x128xf32, #tpu.memory_space<vmem>>, vector<1x8x128xf32>
    %335 = vector.shape_cast %334 : vector<1x8x128xf32> to vector<8x128xf32>
    %336 = arith.addf %335, %330 : vector<8x128xf32>
    %337 = arith.negf %336 : vector<8x128xf32>
    %338 = math.exp %337 : vector<8x128xf32>
    %cst_141 = arith.constant 1.000000e+00 : f32
    %339 = vector.broadcast %cst_141 : f32 to vector<8x128xf32>
    %340 = arith.addf %339, %338 : vector<8x128xf32>
    %341 = arith.divf %339, %340 : vector<8x128xf32>
    %342 = arith.index_cast %c6_i32 : i32 to index
    %c0_142 = arith.constant 0 : index
    %c0_143 = arith.constant 0 : index
    %343 = vector.load %arg12[%342, %c0_142, %c0_143] : memref<8x8x128xf32, #tpu.memory_space<vmem>>, vector<1x8x128xf32>
    %344 = vector.shape_cast %343 : vector<1x8x128xf32> to vector<8x128xf32>
    %345 = arith.addf %344, %331 : vector<8x128xf32>
    %346 = arith.negf %345 : vector<8x128xf32>
    %347 = math.exp %346 : vector<8x128xf32>
    %cst_144 = arith.constant 1.000000e+00 : f32
    %348 = vector.broadcast %cst_144 : f32 to vector<8x128xf32>
    %349 = arith.addf %348, %347 : vector<8x128xf32>
    %350 = arith.divf %348, %349 : vector<8x128xf32>
    %351 = arith.index_cast %c6_i32 : i32 to index
    %c0_145 = arith.constant 0 : index
    %c0_146 = arith.constant 0 : index
    %352 = vector.load %arg13[%351, %c0_145, %c0_146] : memref<8x8x128xf32, #tpu.memory_space<vmem>>, vector<1x8x128xf32>
    %353 = vector.shape_cast %352 : vector<1x8x128xf32> to vector<8x128xf32>
    %354 = vector.broadcast %38 : vector<1x128xf32> to vector<8x128xf32>
    %355 = arith.addf %332, %354 : vector<8x128xf32>
    %356 = arith.mulf %341, %355 : vector<8x128xf32>
    %357 = arith.addf %353, %356 : vector<8x128xf32>
    %358 = math.tanh %357 : vector<8x128xf32>
    %cst_147 = arith.constant 1.000000e+00 : f32
    %359 = vector.broadcast %cst_147 : f32 to vector<8x128xf32>
    %360 = arith.subf %359, %350 : vector<8x128xf32>
    %361 = arith.mulf %360, %358 : vector<8x128xf32>
    %362 = arith.mulf %350, %329 : vector<8x128xf32>
    %363 = arith.addf %361, %362 : vector<8x128xf32>
    %364 = arith.addi %40, %c6_i32 : i32
    %365 = vector.broadcast %364 : i32 to vector<8x1xi32>
    %366 = arith.cmpi sgt, %39, %365 : vector<8x1xi32>
    %cst_148 = arith.constant 0.000000e+00 : f32
    %367 = vector.shape_cast %366 : vector<8x1xi1> to vector<8x1xi1>
    %368 = vector.broadcast %367 : vector<8x1xi1> to vector<8x128xi1>
    %369 = vector.broadcast %cst_148 : f32 to vector<8x128xf32>
    %370 = arith.select %368, %363, %369 : vector<8x128xi1>, vector<8x128xf32>
    %371 = arith.index_cast %c6_i32 : i32 to index
    %c0_149 = arith.constant 0 : index
    %c0_150 = arith.constant 0 : index
    %372 = vector.load %arg8[%371, %c0_149, %c0_150] : memref<8x8x128xf32, #tpu.memory_space<vmem>>, vector<1x8x128xf32>
    %373 = vector.shape_cast %372 : vector<1x8x128xf32> to vector<8x128xf32>
    %374 = vector.shape_cast %370 : vector<8x128xf32> to vector<1x8x128xf32>
    tpu.vector_store %arg8[%371, %c0_149, %c0_150], %374 {strides = array<i32>} : memref<8x8x128xf32, #tpu.memory_space<vmem>>, vector<1x8x128xf32>,
    %375 = vector.shape_cast %366 : vector<8x1xi1> to vector<8x1xi1>
    %376 = vector.broadcast %375 : vector<8x1xi1> to vector<8x128xi1>
    %377 = arith.select %376, %363, %329 : vector<8x128xi1>, vector<8x128xf32>
    %c7_i32 = arith.constant 7 : i32
    %cst_151 = arith.constant dense<0.000000e+00> : vector<8x128xf32>
    %378 = tpu.matmul %377, %33, %cst_151 {dimension_numbers = #tpu.dot_dimension_numbers<[1], [0], [0], [1], [0, 0, 1, 1], [], []>} : vector<8x128xf32>, vector<128x128xf32>, vector<8x128xf32> -> vector<8x128xf32>
    %cst_152 = arith.constant dense<0.000000e+00> : vector<8x128xf32>
    %379 = tpu.matmul %377, %35, %cst_152 {dimension_numbers = #tpu.dot_dimension_numbers<[1], [0], [0], [1], [0, 0, 1, 1], [], []>} : vector<8x128xf32>, vector<128x128xf32>, vector<8x128xf32> -> vector<8x128xf32>
    %cst_153 = arith.constant dense<0.000000e+00> : vector<8x128xf32>
    %380 = tpu.matmul %377, %37, %cst_153 {dimension_numbers = #tpu.dot_dimension_numbers<[1], [0], [0], [1], [0, 0, 1, 1], [], []>} : vector<8x128xf32>, vector<128x128xf32>, vector<8x128xf32> -> vector<8x128xf32>
    %381 = arith.index_cast %c7_i32 : i32 to index
    %c0_154 = arith.constant 0 : index
    %c0_155 = arith.constant 0 : index
    %382 = vector.load %arg11[%381, %c0_154, %c0_155] : memref<8x8x128xf32, #tpu.memory_space<vmem>>, vector<1x8x128xf32>
    %383 = vector.shape_cast %382 : vector<1x8x128xf32> to vector<8x128xf32>
    %384 = arith.addf %383, %378 : vector<8x128xf32>
    %385 = arith.negf %384 : vector<8x128xf32>
    %386 = math.exp %385 : vector<8x128xf32>
    %cst_156 = arith.constant 1.000000e+00 : f32
    %387 = vector.broadcast %cst_156 : f32 to vector<8x128xf32>
    %388 = arith.addf %387, %386 : vector<8x128xf32>
    %389 = arith.divf %387, %388 : vector<8x128xf32>
    %390 = arith.index_cast %c7_i32 : i32 to index
    %c0_157 = arith.constant 0 : index
    %c0_158 = arith.constant 0 : index
    %391 = vector.load %arg12[%390, %c0_157, %c0_158] : memref<8x8x128xf32, #tpu.memory_space<vmem>>, vector<1x8x128xf32>
    %392 = vector.shape_cast %391 : vector<1x8x128xf32> to vector<8x128xf32>
    %393 = arith.addf %392, %379 : vector<8x128xf32>
    %394 = arith.negf %393 : vector<8x128xf32>
    %395 = math.exp %394 : vector<8x128xf32>
    %cst_159 = arith.constant 1.000000e+00 : f32
    %396 = vector.broadcast %cst_159 : f32 to vector<8x128xf32>
    %397 = arith.addf %396, %395 : vector<8x128xf32>
    %398 = arith.divf %396, %397 : vector<8x128xf32>
    %399 = arith.index_cast %c7_i32 : i32 to index
    %c0_160 = arith.constant 0 : index
    %c0_161 = arith.constant 0 : index
    %400 = vector.load %arg13[%399, %c0_160, %c0_161] : memref<8x8x128xf32, #tpu.memory_space<vmem>>, vector<1x8x128xf32>
    %401 = vector.shape_cast %400 : vector<1x8x128xf32> to vector<8x128xf32>
    %402 = vector.broadcast %38 : vector<1x128xf32> to vector<8x128xf32>
    %403 = arith.addf %380, %402 : vector<8x128xf32>
    %404 = arith.mulf %389, %403 : vector<8x128xf32>
    %405 = arith.addf %401, %404 : vector<8x128xf32>
    %406 = math.tanh %405 : vector<8x128xf32>
    %cst_162 = arith.constant 1.000000e+00 : f32
    %407 = vector.broadcast %cst_162 : f32 to vector<8x128xf32>
    %408 = arith.subf %407, %398 : vector<8x128xf32>
    %409 = arith.mulf %408, %406 : vector<8x128xf32>
    %410 = arith.mulf %398, %377 : vector<8x128xf32>
    %411 = arith.addf %409, %410 : vector<8x128xf32>
    %412 = arith.addi %40, %c7_i32 : i32
    %413 = vector.broadcast %412 : i32 to vector<8x1xi32>
    %414 = arith.cmpi sgt, %39, %413 : vector<8x1xi32>
    %cst_163 = arith.constant 0.000000e+00 : f32
    %415 = vector.shape_cast %414 : vector<8x1xi1> to vector<8x1xi1>
    %416 = vector.broadcast %415 : vector<8x1xi1> to vector<8x128xi1>
    %417 = vector.broadcast %cst_163 : f32 to vector<8x128xf32>
    %418 = arith.select %416, %411, %417 : vector<8x128xi1>, vector<8x128xf32>
    %419 = arith.index_cast %c7_i32 : i32 to index
    %c0_164 = arith.constant 0 : index
    %c0_165 = arith.constant 0 : index
    %420 = vector.load %arg8[%419, %c0_164, %c0_165] : memref<8x8x128xf32, #tpu.memory_space<vmem>>, vector<1x8x128xf32>
    %421 = vector.shape_cast %420 : vector<1x8x128xf32> to vector<8x128xf32>
    %422 = vector.shape_cast %418 : vector<8x128xf32> to vector<1x8x128xf32>
    tpu.vector_store %arg8[%419, %c0_164, %c0_165], %422 {strides = array<i32>} : memref<8x8x128xf32, #tpu.memory_space<vmem>>, vector<1x8x128xf32>,
    %423 = vector.shape_cast %414 : vector<8x1xi1> to vector<8x1xi1>
    %424 = vector.broadcast %423 : vector<8x1xi1> to vector<8x128xi1>
    %425 = arith.select %424, %411, %377 : vector<8x128xi1>, vector<8x128xf32>
    %c8_i32_166 = arith.constant 8 : i32
    %c0_167 = arith.constant 0 : index
    %c0_168 = arith.constant 0 : index
    %426 = vector.load %arg10[%c0_167, %c0_168] : memref<8x128xf32, #tpu.memory_space<vmem>>, vector<8x128xf32>
    tpu.vector_store %arg10[%c0_167, %c0_168], %425 {strides = array<i32>} : memref<8x128xf32, #tpu.memory_space<vmem>>, vector<8x128xf32>,
    %c0_i32_169 = arith.constant 0 : i32
    %427 = arith.cmpi eq, %arg1, %c0_i32_169 : i32
    %428 = arith.extui %427 : i1 to i32
    %c0_i32_170 = arith.constant 0 : i32
    %429 = arith.cmpi ne, %428, %c0_i32_170 : i32
    scf.if %429 {
      %c0_171 = arith.constant 0 : index
      %c0_172 = arith.constant 0 : index
      %c0_173 = arith.constant 0 : index
      %430 = vector.load %arg9[%c0_171, %c0_172, %c0_173] : memref<1x8x128xf32, #tpu.memory_space<vmem>>, vector<1x8x128xf32>
      %431 = vector.shape_cast %430 : vector<1x8x128xf32> to vector<8x128xf32>
      %432 = vector.shape_cast %425 : vector<8x128xf32> to vector<1x8x128xf32>
      tpu.vector_store %arg9[%c0_171, %c0_172, %c0_173], %432 {strides = array<i32>} : memref<1x8x128xf32, #tpu.memory_space<vmem>>, vector<1x8x128xf32>,
    } else {
    }
    return
  }
  func.func @transform_0(%arg0: i32, %arg1: i32) -> (i32, i32, i32) {
    %c0_i32 = arith.constant 0 : i32
    %c0_i32_0 = arith.constant 0 : i32
    return %arg1, %arg0, %c0_i32 : i32, i32, i32
  }
  func.func @transform_1(%arg0: i32, %arg1: i32) -> (i32, i32) {
    %c0_i32 = arith.constant 0 : i32
    %c0_i32_0 = arith.constant 0 : i32
    return %arg0, %c0_i32 : i32, i32
  }
  func.func @transform_2(%arg0: i32, %arg1: i32) -> (i32, i32, i32) {
    %c0_i32 = arith.constant 0 : i32
    %c0_i32_0 = arith.constant 0 : i32
    %c0_i32_1 = arith.constant 0 : i32
    %c0_i32_2 = arith.constant 0 : i32
    return %c0_i32, %c0_i32_0, %c0_i32_1 : i32, i32, i32
  }
  func.func @transform_3(%arg0: i32, %arg1: i32) -> (i32, i32, i32) {
    %c0_i32 = arith.constant 0 : i32
    %c0_i32_0 = arith.constant 0 : i32
    %c0_i32_1 = arith.constant 0 : i32
    %c0_i32_2 = arith.constant 0 : i32
    return %c0_i32, %c0_i32_0, %c0_i32_1 : i32, i32, i32
  }
  func.func @transform_4(%arg0: i32, %arg1: i32) -> (i32, i32, i32) {
    %c0_i32 = arith.constant 0 : i32
    %c0_i32_0 = arith.constant 0 : i32
    %c0_i32_1 = arith.constant 0 : i32
    %c0_i32_2 = arith.constant 0 : i32
    return %c0_i32, %c0_i32_0, %c0_i32_1 : i32, i32, i32
  }
  func.func @transform_5(%arg0: i32, %arg1: i32) -> (i32, i32) {
    %c0_i32 = arith.constant 0 : i32
    %c0_i32_0 = arith.constant 0 : i32
    %c0_i32_1 = arith.constant 0 : i32
    return %c0_i32, %c0_i32_0 : i32, i32
  }
  func.func @transform_6(%arg0: i32, %arg1: i32) -> (i32, i32, i32) {
    %c0_i32 = arith.constant 0 : i32
    %c0_i32_0 = arith.constant 0 : i32
    return %arg1, %arg0, %c0_i32 : i32, i32, i32
  }
  func.func @transform_7(%arg0: i32, %arg1: i32) -> (i32, i32, i32) {
    %c0_i32 = arith.constant 0 : i32
    %c0_i32_0 = arith.constant 0 : i32
    %c0_i32_1 = arith.constant 0 : i32
    return %c0_i32, %arg0, %c0_i32_0 : i32, i32, i32
  }
}

</mosaic_0001>

<bundles_post_ra>
// kernel: tpu_custom_call.1
= control target key start
LH: loop header
LB: loop body
LE: loop exit
PB: predicated region body
PF: predicated region fallthrough
CT: control target
= control target key end

     0   :  { %13 = vsyncpa [#allocation7], 0  ;;  %s5744_s0 = inlined_call_operand.hbm [shape: f32[8,8,128], index: 0, kind: input, shape index: {}]   ;;  %s5745_s1 = inlined_call_operand.vmem [shape: s32[8,1], index: 1, kind: input, shape index: {}]   ;;  %s5746_s2 = inlined_call_operand.hbm [shape: f32[3,128,128], index: 2, kind: input, shape index: {}]   ;;  %s5747_s3 = inlined_call_operand.hbm [shape: f32[3,128,128], index: 3, kind: input, shape index: {}]   ;;  %s5748_s4 = inlined_call_operand.vmem [shape: f32[3,1,128], index: 4, kind: input, shape index: {}]   ;;  %s5749_s5 = inlined_call_operand.vmem [shape: f32[1,128], index: 5, kind: input, shape index: {}]   ;;  %s5750_s6 = inlined_call_operand.hbm [shape: f32[8,8,128], index: 6, kind: output, shape index: {0}]   ;;  %s5751_s7 = inlined_call_operand.hbm [shape: f32[1,8,128], index: 7, kind: output, shape index: {1}]  }
   0x1   :  { %14 = vsyncpa [#allocation10], 0 }
   0x2   :  { %15 = vsyncpa [#allocation8], 0 }
   0x3   :  { %16 = vsyncpa [#allocation14], 0  ;;  %s4938_s24 = smov [#allocation9]   ;;  %s4939_s26 = smov [#allocation6]  }
   0x4   :  { %s36_s25 = sshll.u32 %s4938_s24, 4  ;;  %s22_s27 = sshll.u32 %s4939_s26, 4  ;;  %s37_s25 = int_to_ptr.vmem [resolvable:$true] %s36_s25  ;;  %s4989_s27 = int_to_ptr.vmem [resolvable:$true] %s22_s27 }
   0x5   :  { %s4820_s30 = scalar_lea.hbm %s5746_s2, 6144 }
   0x6   :  { %p4821_p0 = scmp.ne.s32.totalorder %s5746_s2, %s4820_s30  ;;  %p4824_p1 = scmp.lt.u32.totalorder %s4820_s30, %s5746_s2 }
   0x8   :  { %p4826_p2 = pnand %p4824_p1, %p4821_p0 }
   0xa   :  { %4829 = shalt.err (!%p4826_p2)
}
   0xb   :  { %s4830_s12 = scalar_lea.vmem %s37_s25, 6144  ;;  %p4835_p4 = scmp.lt.s32.totalorder %s37_s25, %s37_s25 }
   0xc   :  { %p4831_p3 = scmp.ne.s32.totalorder %s37_s25, %s4830_s12  ;;  %p4836_p5 = scmp.lt.s32.totalorder %s4830_s12, %s4830_s12 }
   0xe   :  { %p4837_p6 = por %p4836_p5, %p4835_p4 }
  0x10   :  { %p4838_p7 = pnand %p4837_p6, %p4831_p3 }
  0x12   :  { %4841 = shalt.err (!%p4838_p7)
}
  0x13   :  { %s4940_s13 = smov 128   ;;  %s4941_s14 = smov 8  }
  0x14   :  { %42 = dma.hbm_to_vmem [thread:$0]  %s5746_s2, 6144, %s37_s25, [#allocation10], %s4940_s13, %s4940_s13, %s4941_s14  }
  0x15   :  { %s4842_s19 = scalar_lea.hbm %s5744_s0, 1024 }
  0x16   :  { %p4843_p8 = scmp.ne.s32.totalorder %s5744_s0, %s4842_s19  ;;  %p4846_p9 = scmp.lt.u32.totalorder %s4842_s19, %s5744_s0 }
  0x18   :  { %p4848_p10 = pnand %p4846_p9, %p4843_p8 }
  0x1a   :  { %4851 = shalt.err (!%p4848_p10)
}
  0x1b   :  { %s4852_s24 = scalar_lea.vmem %s4989_s27, 1024  ;;  %p4857_p12 = scmp.lt.s32.totalorder %s4989_s27, %s4989_s27 }
  0x1c   :  { %p4853_p11 = scmp.ne.s32.totalorder %s4989_s27, %s4852_s24  ;;  %p4858_p13 = scmp.lt.s32.totalorder %s4852_s24, %s4852_s24 }
  0x1e   :  { %p4859_p0 = por %p4858_p13, %p4857_p12 }
  0x20   :  { %p4860_p1 = pnand %p4859_p0, %p4853_p11 }
  0x22   :  { %4863 = shalt.err (!%p4860_p1)
}
  0x23   :  { %28 = dma.hbm_to_vmem [thread:$0]  %s5744_s0, 1024, %s4989_s27, [#allocation7], %s4940_s13, %s4940_s13, %s4941_s14  }
  0x24   :  { %s4942_s26 = smov [#allocation11]   ;;  %s4864_s8 = scalar_lea.hbm %s5747_s3, 6144 }
  0x25   :  { %s48_s28 = sshll.u32 %s4942_s26, 4  ;;  %p4865_p2 = scmp.ne.s32.totalorder %s5747_s3, %s4864_s8  ;;  %s49_s28 = int_to_ptr.vmem [resolvable:$true] %s48_s28 }
  0x26   :  { %p4868_p3 = scmp.lt.u32.totalorder %s4864_s8, %s5747_s3 }
  0x28   :  { %p4870_p4 = pnand %p4868_p3, %p4865_p2 }
  0x2a   :  { %4873 = shalt.err (!%p4870_p4)
}
  0x2b   :  { %s4874_s15 = scalar_lea.vmem %s49_s28, 6144  ;;  %p4879_p6 = scmp.lt.s32.totalorder %s49_s28, %s49_s28 }
  0x2c   :  { %p4875_p5 = scmp.ne.s32.totalorder %s49_s28, %s4874_s15  ;;  %p4880_p7 = scmp.lt.s32.totalorder %s4874_s15, %s4874_s15 }
  0x2e   :  { %p4881_p8 = por %p4880_p7, %p4879_p6 }
  0x30   :  { %p4882_p9 = pnand %p4881_p8, %p4875_p5 }
  0x32   :  { %4885 = shalt.err (!%p4882_p9)
}
  0x33   :  { %54 = dma.hbm_to_vmem [thread:$0]  %s5747_s3, 6144, %s49_s28, [#allocation10], %s4940_s13, %s4940_s13, %s4941_s14  }
  0x34   :  { %4930 = dma.done.wait [#allocation7], 1024  }
  0x35   :  { %4931 = vsyncadd [#allocation7], 4294966272 }
  0x36   :  { %4932 = dma.done.wait [#allocation10], 12288  }
  0x37   :  { %4933 = vsyncadd [#allocation10], 4294955008  ;;  %v5752_v0 = vmov 0   ;;  %v81_v1 = vld [vmem:[#allocation9] sm:$0xff]  ;;  %v82_v2 = vld [vmem:[#allocation9 + $0x8] sm:$0xff]  ;;  %v5754_v61 = vmov 0.0|0.0  }
  0x38   :  { %4737 = vset.pattern.permute.xlu0 %v5752_v0  ;;  %4738 = vset.pattern.permute.xlu1 %v5752_v0  ;;  %v218_v3 = vld [vmem:[#allocation9 + $0x80] sm:$0xff]  ;;  %v4054_v4 = vpack.c.bf16 %v82_v2, %v81_v1  ;;  %v219_v5 = vld [vmem:[#allocation9 + $0x88] sm:$0xff]  ;;  %v83_v6 = vld [vmem:[#allocation9 + $0x10] sm:$0xff]  ;;  %vm4945_vm2 = vmmov 0   ;;  %s4948_s25 = smov [#allocation13]  }
  0x39   :  { %v84_v7 = vld [vmem:[#allocation9 + $0x18] sm:$0xff]  ;;  %v4086_v8 = vpack.c.bf16 %v219_v5, %v218_v3  ;;  %v220_v10 = vld [vmem:[#allocation9 + $0x90] sm:$0xff]  ;;  %v85_v12 = vld [vmem:[#allocation9 + $0x20] sm:$0xff]  ;;  %s2563_s26 = sshll.u32 %s4948_s25, 4  ;;  %s2564_s26 = int_to_ptr.vmem [resolvable:$true] %s2563_s26 }
  0x3a   :  { %v4058_v9 = vpack.c.bf16 %v84_v7, %v83_v6  ;;  %v221_v11 = vld [vmem:[#allocation9 + $0x98] sm:$0xff]  ;;  %4055 = vmatprep.subr.bf16.mxu0 %v4054_v4  ;;  %v86_v14 = vld [vmem:[#allocation9 + $0x28] sm:$0xff]  ;;  %v222_v15 = vld [vmem:[#allocation9 + $0xa0] sm:$0xff] }
  0x3b   :  { %v4090_v13 = vpack.c.bf16 %v221_v11, %v220_v10  ;;  %v223_v16 = vld [vmem:[#allocation9 + $0xa8] sm:$0xff]  ;;  %4087 = vmatprep.subr.bf16.mxu1 %v4086_v8  ;;  %4057 = vmatpush3.bf16.msra.mxu0 %v4054_v4  ;;  %v4062_v17 = vpack.c.bf16 %v86_v14, %v85_v12  ;;  %v87_v19 = vld [vmem:[#allocation9 + $0x30] sm:$0xff]  ;;  %v88_v20 = vld [vmem:[#allocation9 + $0x38] sm:$0xff] }
  0x3c   :  { %4089 = vmatpush3.bf16.msra.mxu1 %v4086_v8  ;;  %4059 = vmatprep.subr.bf16.mxu0 %v4058_v9  ;;  %v4094_v18 = vpack.c.bf16 %v223_v16, %v222_v15  ;;  %v224_v21 = vld [vmem:[#allocation9 + $0xb0] sm:$0xff]  ;;  %v225_v22 = vld [vmem:[#allocation9 + $0xb8] sm:$0xff]  ;;  %v4066_v23 = vpack.c.bf16 %v88_v20, %v87_v19  ;;  %v89_v25 = vld [vmem:[#allocation9 + $0x40] sm:$0xff] }
  0x3d   :  { %4091 = vmatprep.subr.bf16.mxu1 %v4090_v13  ;;  %v4098_v24 = vpack.c.bf16 %v225_v22, %v224_v21  ;;  %v90_v26 = vld [vmem:[#allocation9 + $0x48] sm:$0xff]  ;;  %v5043_v27 = vld [vmem:[#allocation6] sm:$0xff]  ;;  %v91_v32 = vld [vmem:[#allocation9 + $0x50] sm:$0xff] }
  0x3e   :  { %v226_v28 = vld [vmem:[#allocation9 + $0xc0] sm:$0xff]  ;;  %v227_v29 = vld [vmem:[#allocation9 + $0xc8] sm:$0xff]  ;;  %3114 = vmatprep.mubr.f32.mxu0 %v5043_v27  ;;  %3158 = vmatprep.mubr.f32.mxu1 %v5043_v27  ;;  %v4070_v30 = vpack.c.bf16 %v90_v26, %v89_v25  ;;  %v92_v33 = vld [vmem:[#allocation9 + $0x58] sm:$0xff] }
  0x3f   :  { %4061 = vmatpush3.bf16.msra.mxu0 %v4058_v9  ;;  %v4102_v31 = vpack.c.bf16 %v227_v29, %v226_v28  ;;  %v228_v34 = vld [vmem:[#allocation9 + $0xd0] sm:$0xff]  ;;  %v229_v35 = vld [vmem:[#allocation9 + $0xd8] sm:$0xff]  ;;  %v4074_v36 = vpack.c.bf16 %v92_v33, %v91_v32  ;;  %v93_v38 = vld [vmem:[#allocation9 + $0x60] sm:$0xff] }
  0x40   :  { %4093 = vmatpush3.bf16.msra.mxu1 %v4090_v13  ;;  %4063 = vmatprep.subr.bf16.mxu0 %v4062_v17  ;;  %v4106_v37 = vpack.c.bf16 %v229_v35, %v228_v34  ;;  %v94_v39 = vld [vmem:[#allocation9 + $0x68] sm:$0xff]  ;;  %v230_v40 = vld [vmem:[#allocation9 + $0xe0] sm:$0xff]  ;;  %v95_v44 = vld [vmem:[#allocation9 + $0x70] sm:$0xff]  ;;  %v5756_v35 = vmov 0.0  }
  0x41   :  { %4095 = vmatprep.subr.bf16.mxu1 %v4094_v18  ;;  %v231_v41 = vld [vmem:[#allocation9 + $0xe8] sm:$0xff]  ;;  %v4078_v42 = vpack.c.bf16 %v94_v39, %v93_v38  ;;  %v96_v45 = vld [vmem:[#allocation9 + $0x78] sm:$0xff]  ;;  %v232_v46 = vld [vmem:[#allocation9 + $0xf0] sm:$0xff] }
  0x42   :  { %v4110_v43 = vpack.c.bf16 %v231_v41, %v230_v40  ;;  %v233_v47 = vld [vmem:[#allocation9 + $0xf8] sm:$0xff]  ;;  %v4082_v48 = vpack.c.bf16 %v96_v45, %v95_v44  ;;  %v356_v50 = vld [vmem:[#allocation9 + $0x100] sm:$0xff]  ;;  %v357_v51 = vld [vmem:[#allocation9 + $0x108] sm:$0xff] }
  0x43   :  { %4065 = vmatpush3.bf16.msra.mxu0 %v4062_v17  ;;  %v4114_v49 = vpack.c.bf16 %v233_v47, %v232_v46  ;;  %v4118_v52 = vpack.c.bf16 %v357_v51, %v356_v50  ;;  %v493_v53 = vld [vmem:[#allocation11] sm:$0xff]  ;;  %v494_v54 = vld [vmem:[#allocation11 + $0x8] sm:$0xff]  ;;  %v358_v55 = vld [vmem:[#allocation9 + $0x110] sm:$0xff] }
  0x44   :  { %4097 = vmatpush3.bf16.msra.mxu1 %v4094_v18  ;;  %4067 = vmatprep.subr.bf16.mxu0 %v4066_v23  ;;  %v359_v56 = vld [vmem:[#allocation9 + $0x118] sm:$0xff]  ;;  %v5047_v57 = vld [vmem:[#allocation6 + $0x8] sm:$0xff]  ;;  %v5049_v58 = vpack.c.bf16 %v494_v54, %v493_v53  ;;  %v495_v60 = vld [vmem:[#allocation11 + $0x10] sm:$0xff] }
  0x45   :  { %4099 = vmatprep.subr.bf16.mxu1 %v4098_v24  ;;  %v4122_v59 = vpack.c.bf16 %v359_v56, %v358_v55  ;;  %v496_v62 = vld [vmem:[#allocation11 + $0x18] sm:$0xff]  ;;  %v360_v63 = vld [vmem:[#allocation9 + $0x120] sm:$0xff]  ;;  %v361_v1 = vld [vmem:[#allocation9 + $0x128] sm:$0xff] }
  0x46   :  { %v5053_v2 = vld [vmem:[#allocation6 + $0x10] sm:$0xff]  ;;  %v5056_v3 = vld [vmem:[#allocation6 + $0x18] sm:$0xff]  ;;  %v5059_v4 = vpack.c.bf16 %v496_v62, %v495_v60  ;;  %v4126_v5 = vpack.c.bf16 %v361_v1, %v360_v63  ;;  %v497_v6 = vld [vmem:[#allocation11 + $0x20] sm:$0xff] }
  0x47   :  { %4069 = vmatpush3.bf16.msra.mxu0 %v4066_v23  ;;  %v498_v7 = vld [vmem:[#allocation11 + $0x28] sm:$0xff]  ;;  %v362_v8 = vld [vmem:[#allocation9 + $0x130] sm:$0xff]  ;;  %v363_v9 = vld [vmem:[#allocation9 + $0x138] sm:$0xff] }
  0x48   :  { %4101 = vmatpush3.bf16.msra.mxu1 %v4098_v24  ;;  %4071 = vmatprep.subr.bf16.mxu0 %v4070_v30  ;;  %v5065_v10 = vld [vmem:[#allocation6 + $0x20] sm:$0xff]  ;;  %v5068_v11 = vld [vmem:[#allocation6 + $0x28] sm:$0xff]  ;;  %v5071_v12 = vpack.c.bf16 %v498_v7, %v497_v6  ;;  %v4130_v13 = vpack.c.bf16 %v363_v9, %v362_v8  ;;  %v499_v14 = vld [vmem:[#allocation11 + $0x30] sm:$0xff] }
  0x49   :  { %4103 = vmatprep.subr.bf16.mxu1 %v4102_v31  ;;  %v500_v15 = vld [vmem:[#allocation11 + $0x38] sm:$0xff]  ;;  %v364_v16 = vld [vmem:[#allocation9 + $0x140] sm:$0xff]  ;;  %v365_v17 = vld [vmem:[#allocation9 + $0x148] sm:$0xff] }
  0x4a   :  { %v5078_v18 = vld [vmem:[%s5745_s1] sm:$0xff]  ;;  %v5082_v19 = vld [vmem:[#allocation6 + $0x30] sm:$0xff]  ;;  %v5085_v20 = vld [vmem:[#allocation6 + $0x38] sm:$0xff]  ;;  %v5088_v21 = vpack.c.bf16 %v500_v15, %v499_v14  ;;  %v4134_v22 = vpack.c.bf16 %v365_v17, %v364_v16 }
  0x4b   :  { %4073 = vmatpush3.bf16.msra.mxu0 %v4070_v30  ;;  %v501_v23 = vld [vmem:[#allocation11 + $0x40] sm:$0xff]  ;;  %vm788_vm0 = vcmp.gt.s32.totalorder %v5078_v18, 0  ;;  %v502_v24 = vld [vmem:[#allocation11 + $0x48] sm:$0xff]  ;;  %v366_v25 = vld [vmem:[#allocation9 + $0x150] sm:$0xff]  ;;  %vm1036_vm1 = vcmp.gt.s32.totalorder %v5078_v18, 1  ;;  %vm1783_vm3 = vcmp.gt.s32.totalorder %v5078_v18, 4 }
  0x4c   :  { %4105 = vmatpush3.bf16.msra.mxu1 %v4102_v31  ;;  %4075 = vmatprep.subr.bf16.mxu0 %v4074_v36  ;;  %v367_v26 = vld [vmem:[#allocation9 + $0x158] sm:$0xff]  ;;  %v789_v28 = vsel %vm788_vm0, 1, %v5752_v0  ;;  %v5098_v29 = vpack.c.bf16 %v502_v24, %v501_v23  ;;  %v503_v31 = vld [vmem:[#allocation11 + $0x50] sm:$0xff]  ;;  %v368_v33 = vld [vmem:[#allocation9 + $0x160] sm:$0xff]  ;;  %vm2281_vm4 = vcmp.gt.s32.totalorder %v5078_v18, 6  ;;  %vm1285_vm6 = vcmp.gt.s32.totalorder %v5078_v18, 2 }
  0x4d   :  { %4107 = vmatprep.subr.bf16.mxu1 %v4106_v37  ;;  %v4138_v30 = vpack.c.bf16 %v367_v26, %v366_v25  ;;  %v504_v32 = vld [vmem:[#allocation11 + $0x58] sm:$0xff]  ;;  %v369_v34 = vld [vmem:[#allocation9 + $0x168] sm:$0xff]  ;;  %791 = vperm.xlu0 %4737, %v789_v28   ;;  %v505_v39 = vld [vmem:[#allocation11 + $0x60] sm:$0xff]  ;;  %v2282_v47 = vsel %vm2281_vm4, 1, %v5752_v0  ;;  %vm1534_vm7 = vcmp.gt.s32.totalorder %v5078_v18, 3  ;;  %vm2032_vm8 = vcmp.gt.s32.totalorder %v5078_v18, 5 }
  0x4e   :  { %v4142_v38 = vpack.c.bf16 %v369_v34, %v368_v33  ;;  %v370_v40 = vld [vmem:[#allocation9 + $0x170] sm:$0xff]  ;;  %v371_v41 = vld [vmem:[#allocation9 + $0x178] sm:$0xff]  ;;  %v511_v50 = vld [vmem:[#allocation11 + $0x88] sm:$0xff]  ;;  %vm2530_vm9 = vcmp.gt.s32.totalorder %v5078_v18, 7 }
  0x4f   :  { %4077 = vmatpush3.bf16.msra.mxu0 %v4074_v36  ;;  %v1037_v36 = vsel %vm1036_vm1, 1, %v5752_v0  ;;  %v4146_v44 = vpack.c.bf16 %v371_v41, %v370_v40  ;;  %v507_v45 = vld [vmem:[#allocation11 + $0x70] sm:$0xff]  ;;  %v508_v46 = vld [vmem:[#allocation11 + $0x78] sm:$0xff]  ;;  %v527_v51 = vld [vmem:[#allocation11 + $0x100] sm:$0xff] }
  0x50   :  { %4109 = vmatpush3.bf16.msra.mxu1 %v4106_v37  ;;  %4079 = vmatprep.subr.bf16.mxu0 %v4078_v42  ;;  %v5107_v37 = vpack.c.bf16 %v504_v32, %v503_v31  ;;  %v512_v55 = vld [vmem:[#allocation11 + $0x90] sm:$0xff]  ;;  %v513_v56 = vld [vmem:[#allocation11 + $0x98] sm:$0xff]  ;;  %v514_v1 = vld [vmem:[#allocation11 + $0xa0] sm:$0xff] }
  0x51   :  { %4111 = vmatprep.subr.bf16.mxu1 %v4110_v43  ;;  %1039 = vperm.xlu0 %4737, %v1037_v36   ;;  %v530_v60 = vld [vmem:[#allocation11 + $0x118] sm:$0xff]  ;;  %v5132_v62 = vpack.c.bf16 %v513_v56, %v512_v55  ;;  %v531_v6 = vld [vmem:[#allocation11 + $0x120] sm:$0xff]  ;;  %v532_v7 = vld [vmem:[#allocation11 + $0x128] sm:$0xff] }
  0x52   :  { %v5149_v8 = vpack.c.bf16 %v532_v7, %v531_v6  ;;  %v516_v9 = vld [vmem:[#allocation11 + $0xb0] sm:$0xff]  ;;  %v518_v15 = vld [vmem:[#allocation11 + $0xc0] sm:$0xff]  ;;  %v519_v16 = vld [vmem:[#allocation11 + $0xc8] sm:$0xff] }
  0x53   :  { %4081 = vmatpush3.bf16.msra.mxu0 %v4078_v42  ;;  %v1784_v42 = vsel %vm1783_vm3, 1, %v5752_v0  ;;  %v535_v17 = vld [vmem:[#allocation11 + $0x140] sm:$0xff]  ;;  %v520_v23 = vld [vmem:[#allocation11 + $0xd0] sm:$0xff]  ;;  %v521_v24 = vld [vmem:[#allocation11 + $0xd8] sm:$0xff] }
  0x54   :  { %4113 = vmatpush3.bf16.msra.mxu1 %v4110_v43  ;;  %4083 = vmatprep.subr.bf16.mxu0 %v4082_v48  ;;  %v537_v25 = vld [vmem:[#allocation11 + $0x150] sm:$0xff]  ;;  %v538_v26 = vld [vmem:[#allocation11 + $0x158] sm:$0xff]  ;;  %v523_v31 = vld [vmem:[#allocation11 + $0xe8] sm:$0xff] }
  0x55   :  { %4115 = vmatprep.subr.bf16.mxu1 %v4114_v49  ;;  %1786 = vperm.xlu0 %4737, %v1784_v42   ;;  %v5178_v28 = vpack.c.bf16 %v538_v26, %v537_v25  ;;  %v539_v32 = vld [vmem:[#allocation11 + $0x160] sm:$0xff]  ;;  %v540_v33 = vld [vmem:[#allocation11 + $0x168] sm:$0xff]  ;;  %v542_v40 = vld [vmem:[#allocation11 + $0x178] sm:$0xff] }
  0x56   :  { %v5186_v36 = vpack.c.bf16 %v540_v33, %v539_v32 }
  0x57   :  { %4085 = vmatpush3.bf16.msra.mxu0 %v4082_v48  ;;  %v5119_v48 = vpack.c.bf16 %v508_v46, %v507_v45  ;;  %v2579_v45 = vld [vmem:[%s5748_s4 + $0x1] ss:$0 sm:$0xff] }
  0x58   :  { %4117 = vmatpush3.bf16.msra.mxu1 %v4114_v49  ;;  %4119 = vmatprep.subr.bf16.mxu0 %v4118_v52  ;;  %v510_v49 = vld [vmem:[#allocation11 + $0x80] sm:$0xff] }
  0x59   :  { %4150 = vmatprep.subr.bf16.mxu1 %v5754_v61  ;;  %2284 = vperm.xlu0 %4737, %v2282_v47   ;;  %v5122_v53 = vpack.c.bf16 %v511_v50, %v510_v49 }
  0x5a   :  { %3115 = vmatmul.mubr.f32.vlgmr.msra.gmra.mrb[0].mxu0 %v5047_v57 }
  0x5b   :  { %3159 = vmatmul.mubr.f32.vlgmr.msra.gmra.mrb[0].mxu1 %v5047_v57  ;;  %4121 = vmatpush3.bf16.msra.mxu0 %v4118_v52  ;;  %v528_v52 = vld [vmem:[#allocation11 + $0x108] sm:$0xff] }
  0x5c   :  { %4152 = vmatpush3.bf16.msra.mxu1 %v5049_v58  ;;  %4123 = vmatprep.subr.bf16.mxu0 %v4122_v59  ;;  %v5126_v54 = vpack.c.bf16 %v528_v52, %v527_v51 }
  0x5d   :  { %4153 = vmatprep.subr.bf16.mxu1 %v5754_v61  ;;  %3117 = vmatprep.mubr.f32.mxu0 %v5053_v2 }
  0x5e   :  { %3161 = vmatprep.mubr.f32.mxu1 %v5053_v2  ;;  %3118 = vmatmul.mubr.f32.gmra.mrb[2].mxu0 %v5056_v3 }
  0x5f   :  { %4125 = vmatpush3.bf16.msra.mxu0 %v4122_v59  ;;  %3162 = vmatmul.mubr.f32.gmra.mrb[2].mxu1 %v5056_v3  ;;  %v529_v59 = vld [vmem:[#allocation11 + $0x110] sm:$0xff] }
  0x60   :  { %4155 = vmatpush3.bf16.msra.mxu1 %v5059_v4  ;;  %4127 = vmatprep.subr.bf16.mxu0 %v4126_v5  ;;  %v5136_v63 = vpack.c.bf16 %v530_v60, %v529_v59 }
  0x61   :  { %4156 = vmatprep.subr.bf16.mxu1 %v5754_v61  ;;  %3120 = vmatprep.mubr.f32.mxu0 %v5065_v10 }
  0x62   :  { %3164 = vmatprep.mubr.f32.mxu1 %v5065_v10  ;;  %3121 = vmatmul.mubr.f32.gmra.mrb[4].mxu0 %v5068_v11 }
  0x63   :  { %4129 = vmatpush3.bf16.msra.mxu0 %v4126_v5  ;;  %3165 = vmatmul.mubr.f32.gmra.mrb[4].mxu1 %v5068_v11  ;;  %v515_v5 = vld [vmem:[#allocation11 + $0xa8] sm:$0xff] }
  0x64   :  { %4158 = vmatpush3.bf16.msra.mxu1 %v5071_v12  ;;  %4131 = vmatprep.subr.bf16.mxu0 %v4130_v13 }
  0x65   :  { %4159 = vmatprep.subr.bf16.mxu1 %v5754_v61  ;;  %3123 = vmatprep.mubr.f32.mxu0 %v5082_v19 }
  0x66   :  { %3167 = vmatprep.mubr.f32.mxu1 %v5082_v19  ;;  %3124 = vmatmul.mubr.f32.gmra.mrb[6].mxu0 %v5085_v20 }
  0x67   :  { %4133 = vmatpush3.bf16.msra.mxu0 %v4130_v13  ;;  %3168 = vmatmul.mubr.f32.gmra.mrb[6].mxu1 %v5085_v20  ;;  %v517_v13 = vld [vmem:[#allocation11 + $0xb8] sm:$0xff] }
  0x68   :  { %4161 = vmatpush3.bf16.msra.mxu1 %v5088_v21  ;;  %4135 = vmatprep.subr.bf16.mxu0 %v4134_v22  ;;  %v5154_v14 = vpack.c.bf16 %v517_v13, %v516_v9 }
  0x69   :  { %4162 = vmatprep.subr.bf16.mxu1 %v5754_v61  ;;  %3202 = vmatprep.mubr.f32.mxu0 %v5043_v27  ;;  %v506_v27 = vld [vmem:[#allocation11 + $0x68] sm:$0xff] }
  0x6a   :  { %3246 = vmatprep.mubr.msk.f32.mxu1 %vm4945_vm2, %v5756_v35  ;;  %v5113_v43 = vpack.c.bf16 %v506_v27, %v505_v39  ;;  %v525_v39 = vld [vmem:[#allocation11 + $0xf8] sm:$0xff]  ;;  %v541_v27 = vld [vmem:[#allocation11 + $0x170] sm:$0xff] }
  0x6b   :  { %4137 = vmatpush3.bf16.msra.mxu0 %v4134_v22  ;;  %v536_v22 = vld [vmem:[#allocation11 + $0x148] sm:$0xff]  ;;  %v5194_v42 = vpack.c.bf16 %v542_v40, %v541_v27 }
  0x6c   :  { %4164 = vmatpush3.bf16.msra.mxu1 %v5098_v29  ;;  %4139 = vmatprep.subr.bf16.mxu0 %v4138_v30 }
  0x6d   :  { %4165 = vmatprep.subr.bf16.mxu1 %v5754_v61 }
  0x6f   :  { %4141 = vmatpush3.bf16.msra.mxu0 %v4138_v30  ;;  %v522_v30 = vld [vmem:[#allocation11 + $0xe0] sm:$0xff] }
  0x70   :  { %4167 = vmatpush3.bf16.msra.mxu1 %v5107_v37  ;;  %4143 = vmatprep.subr.bf16.mxu0 %v4142_v38  ;;  %v5182_v34 = vpack.c.bf16 %v523_v31, %v522_v30 }
  0x71   :  { %4168 = vmatprep.subr.bf16.mxu1 %v5754_v61 }
  0x73   :  { %4145 = vmatpush3.bf16.msra.mxu0 %v4142_v38  ;;  %v524_v38 = vld [vmem:[#allocation11 + $0xf0] sm:$0xff] }
  0x74   :  { %4170 = vmatpush3.bf16.msra.mxu1 %v5113_v43  ;;  %4147 = vmatprep.subr.bf16.mxu0 %v4146_v44  ;;  %v5190_v41 = vpack.c.bf16 %v525_v39, %v524_v38  ;;  %v2581_v38 = vld [vmem:[%s5748_s4 + $0x2] ss:$0 sm:$0xff] }
  0x75   :  { %4171 = vmatprep.subr.bf16.mxu1 %v5754_v61 }
  0x77   :  { %4149 = vmatpush3.bf16.msra.mxu0 %v4146_v44  ;;  %v2577_v44 = vld [vmem:[%s5748_s4] ss:$0 sm:$0xff] }
  0x78   :  { %4173 = vmatpush3.bf16.msra.mxu1 %v5119_v48  ;;  %4174 = vmatprep.subr.bf16.mxu0 %v5754_v61 }
  0x79   :  { %4198 = vmatprep.subr.bf16.mxu1 %v5754_v61 }
  0x7a   :  { %3203 = vmatmul.mubr.f32.vlgmr.msra.gmra.mrb[8].mxu0 %v5047_v57  ;;  %v5144_v57 = vpack.c.bf16 %v515_v5, %v514_v1 }
  0x7b   :  { %3247 = vmatmul.mubr.f32.vlgmr.msra.gmra.mrb[8].mxu1 %v5756_v35  ;;  %4176 = vmatpush3.bf16.msra.mxu0 %v5122_v53 }
  0x7c   :  { %4200 = vmatpush3.bf16.msra.mxu1 %v5126_v54  ;;  %4177 = vmatprep.subr.bf16.mxu0 %v5754_v61 }
  0x7d   :  { %4201 = vmatprep.subr.bf16.mxu1 %v5754_v61  ;;  %3205 = vmatprep.mubr.f32.mxu0 %v5053_v2  ;;  %v533_v2 = vld [vmem:[#allocation11 + $0x130] sm:$0xff] }
  0x7e   :  { %3206 = vmatmul.mubr.f32.gmra.mrb[10].mxu0 %v5056_v3  ;;  %3316 = vmatprep.mubr.msk.f32.mxu1 %vm4945_vm2, %v5756_v35  ;;  %v534_v3 = vld [vmem:[#allocation11 + $0x138] sm:$0xff] }
  0x7f   :  { %4179 = vmatpush3.bf16.msra.mxu0 %v5132_v62  ;;  %3208 = vmatprep.mubr.f32.mxu0 %v5065_v10  ;;  %v5159_v10 = vpack.c.bf16 %v534_v3, %v533_v2 }
  0x80   :  { %4203 = vmatpush3.bf16.msra.mxu1 %v5136_v63  ;;  %4180 = vmatprep.subr.bf16.mxu0 %v5754_v61 }
  0x81   :  { %4204 = vmatprep.subr.bf16.mxu1 %v5754_v61 }
  0x82   :  { %3209 = vmatmul.mubr.f32.gmra.mrb[12].mxu0 %v5068_v11  ;;  %v5164_v11 = vpack.c.bf16 %v519_v16, %v518_v15 }
  0x83   :  { %4182 = vmatpush3.bf16.msra.mxu0 %v5144_v57  ;;  %3211 = vmatprep.mubr.f32.mxu0 %v5082_v19  ;;  %v5170_v19 = vpack.c.bf16 %v536_v22, %v535_v17 }
  0x84   :  { %4206 = vmatpush3.bf16.msra.mxu1 %v5149_v8  ;;  %4183 = vmatprep.subr.bf16.mxu0 %v5754_v61 }
  0x85   :  { %4207 = vmatprep.subr.bf16.mxu1 %v5754_v61 }
  0x86   :  { %3212 = vmatmul.mubr.f32.gmra.mrb[14].mxu0 %v5085_v20  ;;  %v5174_v20 = vpack.c.bf16 %v521_v24, %v520_v23 }
  0x87   :  { %4185 = vmatpush3.bf16.msra.mxu0 %v5154_v14  ;;  %3281 = vmatprep.mubr.msk.f32.mxu0 %vm4945_vm2, %v5756_v35 }
  0x88   :  { %4209 = vmatpush3.bf16.msra.mxu1 %v5159_v10  ;;  %4186 = vmatprep.subr.bf16.mxu0 %v5754_v61 }
  0x89   :  { %4210 = vmatprep.subr.bf16.mxu1 %v5754_v61 }
  0x8b   :  { %4188 = vmatpush3.bf16.msra.mxu0 %v5164_v11 }
  0x8c   :  { %4212 = vmatpush3.bf16.msra.mxu1 %v5170_v19  ;;  %4189 = vmatprep.subr.bf16.mxu0 %v5754_v61 }
  0x8d   :  { %4213 = vmatprep.subr.bf16.mxu1 %v5754_v61 }
  0x8f   :  { %4191 = vmatpush3.bf16.msra.mxu0 %v5174_v20 }
  0x90   :  { %4215 = vmatpush3.bf16.msra.mxu1 %v5178_v28  ;;  %4192 = vmatprep.subr.bf16.mxu0 %v5754_v61 }
  0x91   :  { %4216 = vmatprep.subr.bf16.mxu1 %v5754_v61 }
  0x93   :  { %4194 = vmatpush3.bf16.msra.mxu0 %v5182_v34 }
  0x94   :  { %4218 = vmatpush3.bf16.msra.mxu1 %v5186_v36  ;;  %4195 = vmatprep.subr.bf16.mxu0 %v5754_v61 }
  0x95   :  { %4219 = vmatprep.subr.bf16.mxu1 %v5754_v61 }
  0x97   :  { %4197 = vmatpush3.bf16.msra.mxu0 %v5190_v41 }
  0x98   :  { %4221 = vmatpush3.bf16.msra.mxu1 %v5194_v42  ;;  %4222 = vmatprep.subr.bf16.mxu0 %v5754_v61 }
  0x99   :  { %4246 = vmatprep.subr.bf16.mxu1 %v5754_v61 }
  0x9a   :  { %3282 = vmatmul.mubr.f32.vlgmr.msra.gmra.mrb[16].mxu0 %v5756_v35 }
  0x9b   :  { %3317 = vmatmul.mubr.f32.vlgmr.msra.gmra.mrb[10].mxu1 %v5756_v35  ;;  %4224 = vmatpush3.bf16.msra.mxu0 %v5049_v58 }
  0x9c   :  { %4248 = vmatpush3.bf16.msra.mxu1 %v5122_v53  ;;  %4225 = vmatprep.subr.bf16.mxu0 %v5754_v61 }
  0x9d   :  { %4249 = vmatprep.subr.bf16.mxu1 %v5754_v61  ;;  %3351 = vmatprep.mubr.msk.f32.mxu0 %vm4945_vm2, %v5756_v35 }
  0x9e   :  { %3386 = vmatprep.mubr.msk.f32.mxu1 %vm4945_vm2, %v5756_v35 }
  0x9f   :  { %4227 = vmatpush3.bf16.msra.mxu0 %v5059_v4 }
  0xa0   :  { %4251 = vmatpush3.bf16.msra.mxu1 %v5132_v62  ;;  %4228 = vmatprep.subr.bf16.mxu0 %v5754_v61 }
  0xa1   :  { %4252 = vmatprep.subr.bf16.mxu1 %v5754_v61 }
  0xa3   :  { %4230 = vmatpush3.bf16.msra.mxu0 %v5071_v12 }
  0xa4   :  { %4254 = vmatpush3.bf16.msra.mxu1 %v5144_v57  ;;  %4231 = vmatprep.subr.bf16.mxu0 %v5754_v61 }
  0xa5   :  { %4255 = vmatprep.subr.bf16.mxu1 %v5754_v61 }
  0xa7   :  { %4233 = vmatpush3.bf16.msra.mxu0 %v5088_v21 }
  0xa8   :  { %4257 = vmatpush3.bf16.msra.mxu1 %v5154_v14  ;;  %4234 = vmatprep.subr.bf16.mxu0 %v5754_v61 }
  0xa9   :  { %4258 = vmatprep.subr.bf16.mxu1 %v5754_v61 }
  0xab   :  { %4236 = vmatpush3.bf16.msra.mxu0 %v5098_v29 }
  0xac   :  { %4260 = vmatpush3.bf16.msra.mxu1 %v5164_v11  ;;  %4237 = vmatprep.subr.bf16.mxu0 %v5754_v61 }
  0xad   :  { %4261 = vmatprep.subr.bf16.mxu1 %v5754_v61 }
  0xaf   :  { %4239 = vmatpush3.bf16.msra.mxu0 %v5107_v37 }
  0xb0   :  { %4263 = vmatpush3.bf16.msra.mxu1 %v5174_v20  ;;  %4240 = vmatprep.subr.bf16.mxu0 %v5754_v61 }
  0xb1   :  { %4264 = vmatprep.subr.bf16.mxu1 %v5754_v61 }
  0xb3   :  { %4242 = vmatpush3.bf16.msra.mxu0 %v5113_v43 }
  0xb4   :  { %4266 = vmatpush3.bf16.msra.mxu1 %v5182_v34  ;;  %4243 = vmatprep.subr.bf16.mxu0 %v5754_v61 }
  0xb5   :  { %4267 = vmatprep.subr.bf16.mxu1 %v5754_v61 }
  0xb7   :  { %4245 = vmatpush3.bf16.msra.mxu0 %v5119_v48 }
  0xb8   :  { %4269 = vmatpush3.bf16.msra.mxu1 %v5190_v41  ;;  %4270 = vmatprep.subr.bf16.mxu0 %v5754_v61 }
  0xb9   :  { %4294 = vmatprep.subr.bf16.mxu1 %v5754_v61 }
 0x12d   :  { %v3116_v46 = vpop.f32.mrb[0].mxu0 }
 0x12e   :  { %v5245_v47 = vadd.f32 %v3116_v46, %v2577_v44  ;;  %v170_v49 = vpop.f32.mrb[1].mxu0  ;;  %v3160_v50 = vpop.f32.mrb[0].mxu1 }
 0x12f   :  { %v5247_v51 = vadd.f32 %v3160_v50, %v2579_v45  ;;  %v308_v52 = vpop.f32.mrb[1].mxu1  ;;  %v171_v39 = vadd.f32 %v2577_v44, %v170_v49 }
 0x131   :  { %v3119_v55 = vpop.f32.mrb[2].mxu0 }
 0x132   :  { %v5249_v56 = vadd.f32 %v3119_v55, %v2577_v44  ;;  %v180_v59 = vpop.f32.mrb[3].mxu0  ;;  %v3163_v60 = vpop.f32.mrb[2].mxu1 }
 0x133   :  { %v5251_v1 = vadd.f32 %v2577_v44, %v180_v59  ;;  %v5253_v5 = vadd.f32 %v3163_v60, %v2579_v45  ;;  %v318_v6 = vpop.f32.mrb[3].mxu1 }
 0x134   :  { %v5255_v7 = vadd.f32 %v2579_v45, %v318_v6 }
 0x135   :  { %v3122_v9 = vpop.f32.mrb[4].mxu0 }
 0x136   :  { %v5257_v13 = vadd.f32 %v3122_v9, %v2577_v44  ;;  %v190_v2 = vpop.f32.mrb[5].mxu0  ;;  %v3166_v3 = vpop.f32.mrb[4].mxu1 }
 0x137   :  { %v5259_v15 = vadd.f32 %v2577_v44, %v190_v2  ;;  %v5261_v16 = vadd.f32 %v3166_v3, %v2579_v45  ;;  %v328_v17 = vpop.f32.mrb[5].mxu1 }
 0x138   :  { %v5263_v22 = vadd.f32 %v2579_v45, %v328_v17 }
 0x139   :  { %v3125_v23 = vpop.f32.mrb[6].mxu0 }
 0x13a   :  { %v5265_v24 = vadd.f32 %v3125_v23, %v2577_v44  ;;  %v200_v25 = vpop.f32.mrb[7].mxu0  ;;  %v3169_v26 = vpop.f32.mrb[6].mxu1 }
 0x13b   :  { %v5267_v30 = vadd.f32 %v2577_v44, %v200_v25  ;;  %v5269_v31 = vadd.f32 %v3169_v26, %v2579_v45  ;;  %v338_v32 = vpop.f32.mrb[7].mxu1 }
 0x13c   :  { %5758 = vst [vmem:[#allocation19_spill] sm:$0xff] %v5265_v24  ;;  %v5271_v33 = vadd.f32 %v2579_v45, %v338_v32  ;;  %v792_v24 = vpop.permute.xlu0 %791 }
 0x13d   :  { %5759 = vst [vmem:[#allocation20_spill] sm:$0xff] %v5269_v31  ;;  %vm793_vm5 = vcmp.eq.s32.totalorder %v792_v24, 1 }
 0x14d   :  { %v3204_v27 = vpop.f32.mrb[8].mxu0 }
 0x14e   :  { %v5276_v40 = vadd.f32 %v3204_v27, %v2581_v38  ;;  %v613_v46 = vpop.f32.mrb[8].mxu1  ;;  %v446_v50 = vpop.f32.mrb[9].mxu0 }
 0x14f   :  { %v688_v55 = vadd.f32 %v613_v46, %v171_v39  ;;  %v3248_v59 = vpop.f32.mrb[9].mxu1 }
 0x150   :  { %v5293_v59 = vld [vmem:[%s5749_s5] ss:$0 sm:$0xff] }
 0x151   :  { %v2582_v60 = vmul.f32 -1.442695, %v688_v55  ;;  %v3207_v6 = vpop.f32.mrb[10].mxu0  ;;  %v309_v55 = vadd.f32 %v2579_v45, %v308_v52 }
 0x152   :  { %v5278_v9 = vadd.f32 %v3207_v6, %v2581_v38  ;;  %v456_v2 = vpop.f32.mrb[11].mxu0 }
 0x153   :  { %v5280_v3 = vadd.f32 %v2581_v38, %v456_v2  ;;  %4739 = vpow2.f32 %v2582_v60 }
 0x155   :  { %v3210_v17 = vpop.f32.mrb[12].mxu0 }
 0x156   :  { %v5282_v23 = vadd.f32 %v3210_v17, %v2581_v38  ;;  %v466_v25 = vpop.f32.mrb[13].mxu0 }
 0x157   :  { %v5284_v44 = vadd.f32 %v2581_v38, %v466_v25 }
 0x159   :  { %v3213_v49 = vpop.f32.mrb[14].mxu0 }
 0x15a   :  { %v5286_v26 = vadd.f32 %v3213_v49, %v2581_v38  ;;  %v476_v32 = vpop.f32.mrb[15].mxu0 }
 0x15b   :  { %v5288_v39 = vadd.f32 %v2581_v38, %v476_v32  ;;  %v447_v32 = vadd.f32 %v2581_v38, %v446_v50 }
 0x15c   :  { %5760 = vst [vmem:[#allocation21_spill] sm:$0xff] %v5286_v26 }
 0x15d   :  { %v4740_v27 = vpop.eup %4739 }
 0x15e   :  { %v692_v46 = vadd.f32 1.0, %v4740_v27 }
 0x160   :  { %4741 = vrcp.f32 %v692_v46 }
 0x16a   :  { %v4742_v0 = vpop.eup %4741 }
 0x16d   :  { %v683_v60 = vpop.f32.mrb[16].mxu0 }
 0x16e   :  { %v696_v6 = vadd.f32 %v683_v60, %v309_v55  ;;  %v776_v2 = vpop.f32.mrb[10].mxu1  ;;  %v3283_v17 = vpop.f32.mrb[17].mxu0 }
 0x16f   :  { %v777_v25 = vadd.f32 %v5293_v59, %v776_v2  ;;  %v3318_v49 = vpop.f32.mrb[11].mxu1 }
 0x170   :  { %v2583_v61 = vmul.f32 -1.442695, %v696_v6 }
 0x171   :  { %v780_v35 = vmul.f32 %v4742_v0, %v777_v25  ;;  %v5761_v0 = vmov 0.0  }
 0x172   :  { %4743 = vpow2.f32 %v2583_v61  ;;  %v5762_v61 = vmov 0.0|0.0  }
 0x173   :  { %v781_v27 = vadd.f32 %v780_v35, %v447_v32  ;;  %v5763_v35 = vmov 0  }
 0x174   :  { %v1286_v24 = vsel %vm1285_vm6, 1, %v5763_v35  ;;  %v2033_v38 = vsel %vm2032_vm8, 1, %v5763_v35  ;;  %v2531_v50 = vsel %vm2530_vm9, 1, %v5763_v35 }
 0x175   :  { %1288 = vperm.xlu1 %4738, %v1286_v24  }
 0x17c   :  { %v4744_v46 = vpop.eup %4743 }
 0x17d   :  { %v700_v45 = vadd.f32 1.0, %v4744_v46 }
 0x17f   :  { %4745 = vrcp.f32 %v700_v45 }
 0x180   :  { %4747 = vtanh.f32 %v781_v27 }
 0x189   :  { %v4746_v52 = vpop.eup %4745 }
 0x18a   :  { %v783_v26 = vsub.f32 1.0, %v4746_v52  ;;  %v4748_v31 = vpop.eup %4747  ;;  %v785_v60 = vmul.f32 0.0, %v4746_v52 }
 0x18c   :  { %v784_v55 = vmul.f32 %v4748_v31, %v783_v26  ;;  %v1535_v31 = vsel %vm1534_vm7, 1, %v5763_v35 }
 0x18d   :  { %1537 = vperm.xlu1 %4738, %v1535_v31  }
 0x18e   :  { %v786_v17 = vadd.f32 %v785_v60, %v784_v55 }
 0x190   :  { %v5297_v2 = vsel %vm793_vm5, %v786_v17, 0.0  ;;  %3352 = vmatmul.mubr.msk.f32.vlgmr.msra.gmra.mrb[18].mxu0 %vm793_vm5, %v786_v17  ;;  %3387 = vmatmul.mubr.msk.f32.vlgmr.msra.gmra.mrb[12].mxu1 %vm793_vm5, %v786_v17 }
 0x191   :  { %795 = vst [vmem:[#allocation12] sm:$0xff] %v5297_v2  ;;  %4272 = vmatpush3.bf16.msra.mxu0 %v5126_v54  ;;  %3421 = vmatprep.mubr.msk.f32.mxu0 %vm4945_vm2, %v5761_v0 }
 0x192   :  { %4273 = vmatprep.subr.bf16.mxu0 %v5762_v61  ;;  %4296 = vmatpush3.bf16.msra.mxu1 %v5049_v58 }
 0x193   :  { %4297 = vmatprep.subr.bf16.mxu1 %v5762_v61  ;;  %3456 = vmatprep.mubr.msk.f32.mxu1 %vm4945_vm2, %v5761_v0 }
 0x194   :  { %2035 = vperm.xlu1 %4738, %v2033_v38  }
 0x195   :  { %4275 = vmatpush3.bf16.msra.mxu0 %v5136_v63 }
 0x196   :  { %4276 = vmatprep.subr.bf16.mxu0 %v5762_v61  ;;  %4299 = vmatpush3.bf16.msra.mxu1 %v5059_v4 }
 0x197   :  { %4300 = vmatprep.subr.bf16.mxu1 %v5762_v61 }
 0x198   :  { %2533 = vperm.xlu1 %4738, %v2531_v50  }
 0x199   :  { %4278 = vmatpush3.bf16.msra.mxu0 %v5149_v8 }
 0x19a   :  { %4279 = vmatprep.subr.bf16.mxu0 %v5762_v61  ;;  %4302 = vmatpush3.bf16.msra.mxu1 %v5071_v12 }
 0x19b   :  { %4303 = vmatprep.subr.bf16.mxu1 %v5762_v61 }
 0x19d   :  { %4281 = vmatpush3.bf16.msra.mxu0 %v5159_v10 }
 0x19e   :  { %4282 = vmatprep.subr.bf16.mxu0 %v5762_v61  ;;  %4305 = vmatpush3.bf16.msra.mxu1 %v5088_v21 }
 0x19f   :  { %4306 = vmatprep.subr.bf16.mxu1 %v5762_v61 }
 0x1a1   :  { %4284 = vmatpush3.bf16.msra.mxu0 %v5170_v19 }
 0x1a2   :  { %4285 = vmatprep.subr.bf16.mxu0 %v5762_v61  ;;  %4308 = vmatpush3.bf16.msra.mxu1 %v5098_v29 }
 0x1a3   :  { %4309 = vmatprep.subr.bf16.mxu1 %v5762_v61 }
 0x1a5   :  { %4287 = vmatpush3.bf16.msra.mxu0 %v5178_v28 }
 0x1a6   :  { %4288 = vmatprep.subr.bf16.mxu0 %v5762_v61  ;;  %4311 = vmatpush3.bf16.msra.mxu1 %v5107_v37 }
 0x1a7   :  { %4312 = vmatprep.subr.bf16.mxu1 %v5762_v61 }
 0x1a9   :  { %4290 = vmatpush3.bf16.msra.mxu0 %v5186_v36 }
 0x1aa   :  { %4291 = vmatprep.subr.bf16.mxu0 %v5762_v61  ;;  %4314 = vmatpush3.bf16.msra.mxu1 %v5113_v43 }
 0x1ab   :  { %4315 = vmatprep.subr.bf16.mxu1 %v5762_v61 }
 0x1ad   :  { %4293 = vmatpush3.bf16.msra.mxu0 %v5194_v42 }
 0x1ae   :  { %4318 = vmatprep.subr.bf16.mxu0 %v5762_v61  ;;  %4317 = vmatpush3.bf16.msra.mxu1 %v5119_v48 }
 0x1af   :  { %4342 = vmatprep.subr.bf16.mxu1 %v5762_v61 }
 0x1b0   :  { %3422 = vmatmul.mubr.msk.f32.vlgmr.msra.gmra.mrb[20].mxu0 %vm793_vm5, %v786_v17 }
 0x1b1   :  { %4320 = vmatpush3.bf16.msra.mxu0 %v5122_v53  ;;  %3491 = vmatprep.mubr.msk.f32.mxu0 %vm4945_vm2, %v5761_v0 }
 0x1b2   :  { %4321 = vmatprep.subr.bf16.mxu0 %v5762_v61 }
 0x1b5   :  { %4323 = vmatpush3.bf16.msra.mxu0 %v5132_v62 }
 0x1b6   :  { %4324 = vmatprep.subr.bf16.mxu0 %v5762_v61 }
 0x1b9   :  { %4326 = vmatpush3.bf16.msra.mxu0 %v5144_v57 }
 0x1ba   :  { %4327 = vmatprep.subr.bf16.mxu0 %v5762_v61 }
 0x1bd   :  { %4329 = vmatpush3.bf16.msra.mxu0 %v5154_v14 }
 0x1be   :  { %4330 = vmatprep.subr.bf16.mxu0 %v5762_v61 }
 0x1c1   :  { %4332 = vmatpush3.bf16.msra.mxu0 %v5164_v11 }
 0x1c2   :  { %4333 = vmatprep.subr.bf16.mxu0 %v5762_v61 }
 0x1c5   :  { %4335 = vmatpush3.bf16.msra.mxu0 %v5174_v20 }
 0x1c6   :  { %4336 = vmatprep.subr.bf16.mxu0 %v5762_v61 }
 0x1c9   :  { %4338 = vmatpush3.bf16.msra.mxu0 %v5182_v34 }
 0x1ca   :  { %4339 = vmatprep.subr.bf16.mxu0 %v5762_v61 }
 0x1cd   :  { %4341 = vmatpush3.bf16.msra.mxu0 %v5190_v41 }
 0x1ce   :  { %4366 = vmatprep.subr.bf16.mxu0 %v5762_v61 }
 0x263   :  { %v863_v26 = vpop.f32.mrb[18].mxu0  ;;  %v933_v6 = vpop.f32.mrb[12].mxu1 }
 0x264   :  { %v939_v25 = vadd.f32 %v863_v26, %v5245_v47  ;;  %v948_v49 = vadd.f32 %v933_v6, %v5247_v51  ;;  %v3353_v32 = vpop.f32.mrb[19].mxu0  ;;  %v3388_v27 = vpop.f32.mrb[13].mxu1 }
 0x266   :  { %v2585_v46 = vmul.f32 -1.442695, %v939_v25  ;;  %v2586_v45 = vmul.f32 -1.442695, %v948_v49  ;;  %v1040_v49 = vpop.permute.xlu0 %1039 }
 0x267   :  { %vm1041_vm10 = vcmp.eq.s32.totalorder %v1040_v49, 1 }
 0x268   :  { %4749 = vpow2.f32 %v2585_v46 }
 0x269   :  { %4751 = vpow2.f32 %v2586_v45 }
 0x272   :  { %v4750_v52 = vpop.eup %4749 }
 0x273   :  { %v943_v55 = vadd.f32 1.0, %v4750_v52  ;;  %v4752_v18 = vpop.eup %4751 }
 0x274   :  { %v952_v60 = vadd.f32 1.0, %v4752_v18 }
 0x275   :  { %4753 = vrcp.f32 %v943_v55 }
 0x276   :  { %4755 = vrcp.f32 %v952_v60 }
 0x27f   :  { %v4754_v31 = vpop.eup %4753 }
 0x280   :  { %v4756_v38 = vpop.eup %4755 }
 0x281   :  { %v1030_v50 = vsub.f32 1.0, %v4756_v38  ;;  %v1032_v25 = vmul.f32 %v4756_v38, %v5297_v2 }
 0x283   :  { %v1023_v17 = vpop.f32.mrb[20].mxu0 }
 0x284   :  { %v1024_v35 = vadd.f32 %v5293_v59, %v1023_v17  ;;  %v3423_v24 = vpop.f32.mrb[21].mxu0 }
 0x286   :  { %v1027_v47 = vmul.f32 %v4754_v31, %v1024_v35 }
 0x288   :  { %v1028_v51 = vadd.f32 %v1027_v47, %v5276_v40 }
 0x28a   :  { %4757 = vtanh.f32 %v1028_v51 }
 0x294   :  { %v4758_v26 = vpop.eup %4757 }
 0x295   :  { %v1031_v6 = vmul.f32 %v4758_v26, %v1030_v50 }
 0x297   :  { %v1033_v32 = vadd.f32 %v1032_v25, %v1031_v6 }
 0x299   :  { %v1042_v27 = vsel %vm1041_vm10, %v1033_v32, 0.0  ;;  %v5371_v46 = vsel %vm1041_vm10, %v1033_v32, %v5297_v2  ;;  %v1289_v32 = vpop.permute.xlu1 %1288 }
 0x29a   :  { %1044 = vst [vmem:[#allocation12 + $0x8] sm:$0xff] %v1042_v27  ;;  %3457 = vmatmul.mubr.f32.vlgmr.msra.gmra.mrb[14].mxu1 %v5371_v46  ;;  %3492 = vmatmul.mubr.f32.vlgmr.msra.gmra.mrb[22].mxu0 %v5371_v46  ;;  %vm1290_vm11 = vcmp.eq.s32.totalorder %v1289_v32, 1 }
 0x29b   :  { %4344 = vmatpush3.bf16.msra.mxu1 %v5126_v54  ;;  %3526 = vmatprep.mubr.msk.f32.mxu1 %vm4945_vm2, %v5761_v0 }
 0x29c   :  { %4345 = vmatprep.subr.bf16.mxu1 %v5762_v61  ;;  %4368 = vmatpush3.bf16.msra.mxu0 %v5049_v58 }
 0x29d   :  { %4369 = vmatprep.subr.bf16.mxu0 %v5762_v61  ;;  %3561 = vmatprep.mubr.msk.f32.mxu0 %vm4945_vm2, %v5761_v0 }
 0x29f   :  { %4347 = vmatpush3.bf16.msra.mxu1 %v5136_v63 }
 0x2a0   :  { %4348 = vmatprep.subr.bf16.mxu1 %v5762_v61  ;;  %4371 = vmatpush3.bf16.msra.mxu0 %v5059_v4 }
 0x2a1   :  { %4372 = vmatprep.subr.bf16.mxu0 %v5762_v61 }
 0x2a3   :  { %4350 = vmatpush3.bf16.msra.mxu1 %v5149_v8 }
 0x2a4   :  { %4351 = vmatprep.subr.bf16.mxu1 %v5762_v61  ;;  %4374 = vmatpush3.bf16.msra.mxu0 %v5071_v12 }
 0x2a5   :  { %4375 = vmatprep.subr.bf16.mxu0 %v5762_v61 }
 0x2a7   :  { %4353 = vmatpush3.bf16.msra.mxu1 %v5159_v10 }
 0x2a8   :  { %4354 = vmatprep.subr.bf16.mxu1 %v5762_v61  ;;  %4377 = vmatpush3.bf16.msra.mxu0 %v5088_v21 }
 0x2a9   :  { %4378 = vmatprep.subr.bf16.mxu0 %v5762_v61 }
 0x2ab   :  { %4356 = vmatpush3.bf16.msra.mxu1 %v5170_v19 }
 0x2ac   :  { %4357 = vmatprep.subr.bf16.mxu1 %v5762_v61  ;;  %4380 = vmatpush3.bf16.msra.mxu0 %v5098_v29 }
 0x2ad   :  { %4381 = vmatprep.subr.bf16.mxu0 %v5762_v61 }
 0x2af   :  { %4359 = vmatpush3.bf16.msra.mxu1 %v5178_v28 }
 0x2b0   :  { %4360 = vmatprep.subr.bf16.mxu1 %v5762_v61  ;;  %4383 = vmatpush3.bf16.msra.mxu0 %v5107_v37 }
 0x2b1   :  { %4384 = vmatprep.subr.bf16.mxu0 %v5762_v61 }
 0x2b3   :  { %4362 = vmatpush3.bf16.msra.mxu1 %v5186_v36 }
 0x2b4   :  { %4363 = vmatprep.subr.bf16.mxu1 %v5762_v61  ;;  %4386 = vmatpush3.bf16.msra.mxu0 %v5113_v43 }
 0x2b5   :  { %4387 = vmatprep.subr.bf16.mxu0 %v5762_v61 }
 0x2b7   :  { %4365 = vmatpush3.bf16.msra.mxu1 %v5194_v42 }
 0x2b8   :  { %4390 = vmatprep.subr.bf16.mxu1 %v5762_v61  ;;  %4389 = vmatpush3.bf16.msra.mxu0 %v5119_v48 }
 0x2b9   :  { %4414 = vmatprep.subr.bf16.mxu0 %v5762_v61 }
 0x2ba   :  { %3527 = vmatmul.mubr.f32.vlgmr.msra.gmra.mrb[16].mxu1 %v5371_v46 }
 0x2bb   :  { %4392 = vmatpush3.bf16.msra.mxu1 %v5122_v53  ;;  %3596 = vmatprep.mubr.msk.f32.mxu1 %vm4945_vm2, %v5761_v0 }
 0x2bc   :  { %4393 = vmatprep.subr.bf16.mxu1 %v5762_v61 }
 0x2bf   :  { %4395 = vmatpush3.bf16.msra.mxu1 %v5132_v62 }
 0x2c0   :  { %4396 = vmatprep.subr.bf16.mxu1 %v5762_v61 }
 0x2c3   :  { %4398 = vmatpush3.bf16.msra.mxu1 %v5144_v57 }
 0x2c4   :  { %4399 = vmatprep.subr.bf16.mxu1 %v5762_v61 }
 0x2c7   :  { %4401 = vmatpush3.bf16.msra.mxu1 %v5154_v14 }
 0x2c8   :  { %4402 = vmatprep.subr.bf16.mxu1 %v5762_v61 }
 0x2cb   :  { %4404 = vmatpush3.bf16.msra.mxu1 %v5164_v11 }
 0x2cc   :  { %4405 = vmatprep.subr.bf16.mxu1 %v5762_v61 }
 0x2cf   :  { %4407 = vmatpush3.bf16.msra.mxu1 %v5174_v20 }
 0x2d0   :  { %4408 = vmatprep.subr.bf16.mxu1 %v5762_v61 }
 0x2d3   :  { %4410 = vmatpush3.bf16.msra.mxu1 %v5182_v34 }
 0x2d4   :  { %4411 = vmatprep.subr.bf16.mxu1 %v5762_v61 }
 0x2d7   :  { %4413 = vmatpush3.bf16.msra.mxu1 %v5190_v41 }
 0x2d8   :  { %4438 = vmatprep.subr.bf16.mxu1 %v5762_v61 }
 0x36d   :  { %v1112_v40 = vpop.f32.mrb[14].mxu1  ;;  %v1182_v2 = vpop.f32.mrb[22].mxu0 }
 0x36e   :  { %v1188_v45 = vadd.f32 %v1112_v40, %v5251_v1  ;;  %v1197_v52 = vadd.f32 %v1182_v2, %v5255_v7  ;;  %v3458_v55 = vpop.f32.mrb[15].mxu1  ;;  %v3493_v18 = vpop.f32.mrb[23].mxu0 }
 0x370   :  { %v2587_v60 = vmul.f32 -1.442695, %v1188_v45  ;;  %v2588_v17 = vmul.f32 -1.442695, %v1197_v52 }
 0x372   :  { %4759 = vpow2.f32 %v2587_v60 }
 0x373   :  { %4761 = vpow2.f32 %v2588_v17 }
 0x37c   :  { %v4760_v35 = vpop.eup %4759 }
 0x37d   :  { %v1192_v24 = vadd.f32 1.0, %v4760_v35  ;;  %v4762_v31 = vpop.eup %4761 }
 0x37e   :  { %v1201_v47 = vadd.f32 1.0, %v4762_v31 }
 0x37f   :  { %4763 = vrcp.f32 %v1192_v24 }
 0x380   :  { %4765 = vrcp.f32 %v1201_v47 }
 0x389   :  { %v4764_v26 = vpop.eup %4763 }
 0x38a   :  { %v4766_v6 = vpop.eup %4765 }
 0x38b   :  { %v1279_v25 = vsub.f32 1.0, %v4766_v6  ;;  %v1281_v40 = vmul.f32 %v4766_v6, %v5371_v46 }
 0x38d   :  { %v1272_v51 = vpop.f32.mrb[16].mxu1 }
 0x38e   :  { %v1273_v38 = vadd.f32 %v5293_v59, %v1272_v51  ;;  %v3528_v50 = vpop.f32.mrb[17].mxu1 }
 0x390   :  { %v1276_v1 = vmul.f32 %v4764_v26, %v1273_v38 }
 0x392   :  { %v1277_v7 = vadd.f32 %v1276_v1, %v5280_v3 }
 0x394   :  { %4767 = vtanh.f32 %v1277_v7 }
 0x39e   :  { %v4768_v49 = vpop.eup %4767 }
 0x39f   :  { %v1280_v27 = vmul.f32 %v4768_v49, %v1279_v25 }
 0x3a1   :  { %v1282_v2 = vadd.f32 %v1281_v40, %v1280_v27  ;;  %v1538_v40 = vpop.permute.xlu1 %1537 }
 0x3a2   :  { %vm1539_vm12 = vcmp.eq.s32.totalorder %v1538_v40, 1 }
 0x3a3   :  { %v1291_v45 = vsel %vm1290_vm11, %v1282_v2, 0.0  ;;  %v5436_v52 = vsel %vm1290_vm11, %v1282_v2, %v5371_v46 }
 0x3a4   :  { %1293 = vst [vmem:[#allocation12 + $0x10] sm:$0xff] %v1291_v45  ;;  %3562 = vmatmul.mubr.f32.vlgmr.msra.gmra.mrb[24].mxu0 %v5436_v52  ;;  %3597 = vmatmul.mubr.f32.vlgmr.msra.gmra.mrb[18].mxu1 %v5436_v52 }
 0x3a5   :  { %4416 = vmatpush3.bf16.msra.mxu0 %v5126_v54  ;;  %3631 = vmatprep.mubr.msk.f32.mxu0 %vm4945_vm2, %v5761_v0 }
 0x3a6   :  { %4417 = vmatprep.subr.bf16.mxu0 %v5762_v61  ;;  %4440 = vmatpush3.bf16.msra.mxu1 %v5049_v58 }
 0x3a7   :  { %4441 = vmatprep.subr.bf16.mxu1 %v5762_v61  ;;  %3666 = vmatprep.mubr.msk.f32.mxu1 %vm4945_vm2, %v5761_v0 }
 0x3a9   :  { %4419 = vmatpush3.bf16.msra.mxu0 %v5136_v63 }
 0x3aa   :  { %4420 = vmatprep.subr.bf16.mxu0 %v5762_v61  ;;  %4443 = vmatpush3.bf16.msra.mxu1 %v5059_v4 }
 0x3ab   :  { %4444 = vmatprep.subr.bf16.mxu1 %v5762_v61 }
 0x3ad   :  { %4422 = vmatpush3.bf16.msra.mxu0 %v5149_v8 }
 0x3ae   :  { %4423 = vmatprep.subr.bf16.mxu0 %v5762_v61  ;;  %4446 = vmatpush3.bf16.msra.mxu1 %v5071_v12 }
 0x3af   :  { %4447 = vmatprep.subr.bf16.mxu1 %v5762_v61 }
 0x3b1   :  { %4425 = vmatpush3.bf16.msra.mxu0 %v5159_v10 }
 0x3b2   :  { %4426 = vmatprep.subr.bf16.mxu0 %v5762_v61  ;;  %4449 = vmatpush3.bf16.msra.mxu1 %v5088_v21 }
 0x3b3   :  { %4450 = vmatprep.subr.bf16.mxu1 %v5762_v61 }
 0x3b5   :  { %4428 = vmatpush3.bf16.msra.mxu0 %v5170_v19 }
 0x3b6   :  { %4429 = vmatprep.subr.bf16.mxu0 %v5762_v61  ;;  %4452 = vmatpush3.bf16.msra.mxu1 %v5098_v29 }
 0x3b7   :  { %4453 = vmatprep.subr.bf16.mxu1 %v5762_v61 }
 0x3b9   :  { %4431 = vmatpush3.bf16.msra.mxu0 %v5178_v28 }
 0x3ba   :  { %4432 = vmatprep.subr.bf16.mxu0 %v5762_v61  ;;  %4455 = vmatpush3.bf16.msra.mxu1 %v5107_v37 }
 0x3bb   :  { %4456 = vmatprep.subr.bf16.mxu1 %v5762_v61 }
 0x3bd   :  { %4434 = vmatpush3.bf16.msra.mxu0 %v5186_v36 }
 0x3be   :  { %4435 = vmatprep.subr.bf16.mxu0 %v5762_v61  ;;  %4458 = vmatpush3.bf16.msra.mxu1 %v5113_v43 }
 0x3bf   :  { %4459 = vmatprep.subr.bf16.mxu1 %v5762_v61 }
 0x3c1   :  { %4437 = vmatpush3.bf16.msra.mxu0 %v5194_v42 }
 0x3c2   :  { %4462 = vmatprep.subr.bf16.mxu0 %v5762_v61  ;;  %4461 = vmatpush3.bf16.msra.mxu1 %v5119_v48 }
 0x3c3   :  { %4486 = vmatprep.subr.bf16.mxu1 %v5762_v61 }
 0x3c4   :  { %3632 = vmatmul.mubr.f32.vlgmr.msra.gmra.mrb[26].mxu0 %v5436_v52 }
 0x3c5   :  { %4464 = vmatpush3.bf16.msra.mxu0 %v5122_v53  ;;  %3701 = vmatprep.mubr.msk.f32.mxu0 %vm4945_vm2, %v5761_v0 }
 0x3c6   :  { %4465 = vmatprep.subr.bf16.mxu0 %v5762_v61 }
 0x3c9   :  { %4467 = vmatpush3.bf16.msra.mxu0 %v5132_v62 }
 0x3ca   :  { %4468 = vmatprep.subr.bf16.mxu0 %v5762_v61 }
 0x3cd   :  { %4470 = vmatpush3.bf16.msra.mxu0 %v5144_v57 }
 0x3ce   :  { %4471 = vmatprep.subr.bf16.mxu0 %v5762_v61 }
 0x3d1   :  { %4473 = vmatpush3.bf16.msra.mxu0 %v5154_v14 }
 0x3d2   :  { %4474 = vmatprep.subr.bf16.mxu0 %v5762_v61 }
 0x3d5   :  { %4476 = vmatpush3.bf16.msra.mxu0 %v5164_v11 }
 0x3d6   :  { %4477 = vmatprep.subr.bf16.mxu0 %v5762_v61 }
 0x3d9   :  { %4479 = vmatpush3.bf16.msra.mxu0 %v5174_v20 }
 0x3da   :  { %4480 = vmatprep.subr.bf16.mxu0 %v5762_v61 }
 0x3dd   :  { %4482 = vmatpush3.bf16.msra.mxu0 %v5182_v34 }
 0x3de   :  { %4483 = vmatprep.subr.bf16.mxu0 %v5762_v61 }
 0x3e1   :  { %4485 = vmatpush3.bf16.msra.mxu0 %v5190_v41 }
 0x3e2   :  { %4510 = vmatprep.subr.bf16.mxu0 %v5762_v61 }
 0x477   :  { %v1361_v3 = vpop.f32.mrb[24].mxu0  ;;  %v1431_v46 = vpop.f32.mrb[18].mxu1 }
 0x478   :  { %v1437_v55 = vadd.f32 %v1361_v3, %v5249_v56  ;;  %v1446_v18 = vadd.f32 %v1431_v46, %v5253_v5  ;;  %v3563_v60 = vpop.f32.mrb[25].mxu0  ;;  %v3598_v17 = vpop.f32.mrb[19].mxu1 }
 0x47a   :  { %v2589_v35 = vmul.f32 -1.442695, %v1437_v55  ;;  %v2590_v24 = vmul.f32 -1.442695, %v1446_v18 }
 0x47c   :  { %4769 = vpow2.f32 %v2589_v35 }
 0x47d   :  { %4771 = vpow2.f32 %v2590_v24 }
 0x486   :  { %v4770_v31 = vpop.eup %4769 }
 0x487   :  { %v1441_v47 = vadd.f32 1.0, %v4770_v31  ;;  %v4772_v51 = vpop.eup %4771 }
 0x488   :  { %v1450_v38 = vadd.f32 1.0, %v4772_v51 }
 0x489   :  { %4773 = vrcp.f32 %v1441_v47 }
 0x48a   :  { %4775 = vrcp.f32 %v1450_v38 }
 0x493   :  { %v4774_v7 = vpop.eup %4773 }
 0x494   :  { %v4776_v6 = vpop.eup %4775 }
 0x495   :  { %v1528_v25 = vsub.f32 1.0, %v4776_v6  ;;  %v1530_v27 = vmul.f32 %v4776_v6, %v5436_v52 }
 0x497   :  { %v1521_v50 = vpop.f32.mrb[26].mxu0 }
 0x498   :  { %v1522_v26 = vadd.f32 %v5293_v59, %v1521_v50  ;;  %v3633_v1 = vpop.f32.mrb[27].mxu0 }
 0x49a   :  { %v1525_v56 = vmul.f32 %v4774_v7, %v1522_v26 }
 0x49c   :  { %v1526_v5 = vadd.f32 %v1525_v56, %v5278_v9 }
 0x49e   :  { %4777 = vtanh.f32 %v1526_v5 }
 0x4a8   :  { %v4778_v49 = vpop.eup %4777 }
 0x4a9   :  { %v1529_v32 = vmul.f32 %v4778_v49, %v1528_v25  ;;  %v1787_v49 = vpop.permute.xlu0 %1786 }
 0x4aa   :  { %vm1788_vm13 = vcmp.eq.s32.totalorder %v1787_v49, 1 }
 0x4ab   :  { %v1531_v2 = vadd.f32 %v1530_v27, %v1529_v32 }
 0x4ad   :  { %v1540_v45 = vsel %vm1539_vm12, %v1531_v2, 0.0  ;;  %v5501_v3 = vsel %vm1539_vm12, %v1531_v2, %v5436_v52  ;;  %v2285_v49 = vpop.permute.xlu0 %2284 }
 0x4ae   :  { %1542 = vst [vmem:[#allocation12 + $0x18] sm:$0xff] %v1540_v45  ;;  %3667 = vmatmul.mubr.f32.vlgmr.msra.gmra.mrb[20].mxu1 %v5501_v3  ;;  %3702 = vmatmul.mubr.f32.vlgmr.msra.gmra.mrb[28].mxu0 %v5501_v3  ;;  %vm2286_vm15 = vcmp.eq.s32.totalorder %v2285_v49, 1 }
 0x4af   :  { %4488 = vmatpush3.bf16.msra.mxu1 %v5126_v54  ;;  %3736 = vmatprep.mubr.msk.f32.mxu1 %vm4945_vm2, %v5761_v0 }
 0x4b0   :  { %4489 = vmatprep.subr.bf16.mxu1 %v5762_v61  ;;  %4512 = vmatpush3.bf16.msra.mxu0 %v5049_v58 }
 0x4b1   :  { %4513 = vmatprep.subr.bf16.mxu0 %v5762_v61  ;;  %3771 = vmatprep.mubr.msk.f32.mxu0 %vm4945_vm2, %v5761_v0 }
 0x4b3   :  { %4491 = vmatpush3.bf16.msra.mxu1 %v5136_v63 }
 0x4b4   :  { %4492 = vmatprep.subr.bf16.mxu1 %v5762_v61  ;;  %4515 = vmatpush3.bf16.msra.mxu0 %v5059_v4 }
 0x4b5   :  { %4516 = vmatprep.subr.bf16.mxu0 %v5762_v61 }
 0x4b7   :  { %4494 = vmatpush3.bf16.msra.mxu1 %v5149_v8 }
 0x4b8   :  { %4495 = vmatprep.subr.bf16.mxu1 %v5762_v61  ;;  %4518 = vmatpush3.bf16.msra.mxu0 %v5071_v12 }
 0x4b9   :  { %4519 = vmatprep.subr.bf16.mxu0 %v5762_v61 }
 0x4bb   :  { %4497 = vmatpush3.bf16.msra.mxu1 %v5159_v10 }
 0x4bc   :  { %4498 = vmatprep.subr.bf16.mxu1 %v5762_v61  ;;  %4521 = vmatpush3.bf16.msra.mxu0 %v5088_v21 }
 0x4bd   :  { %4522 = vmatprep.subr.bf16.mxu0 %v5762_v61 }
 0x4bf   :  { %4500 = vmatpush3.bf16.msra.mxu1 %v5170_v19 }
 0x4c0   :  { %4501 = vmatprep.subr.bf16.mxu1 %v5762_v61  ;;  %4524 = vmatpush3.bf16.msra.mxu0 %v5098_v29 }
 0x4c1   :  { %4525 = vmatprep.subr.bf16.mxu0 %v5762_v61 }
 0x4c3   :  { %4503 = vmatpush3.bf16.msra.mxu1 %v5178_v28 }
 0x4c4   :  { %4504 = vmatprep.subr.bf16.mxu1 %v5762_v61  ;;  %4527 = vmatpush3.bf16.msra.mxu0 %v5107_v37 }
 0x4c5   :  { %4528 = vmatprep.subr.bf16.mxu0 %v5762_v61 }
 0x4c7   :  { %4506 = vmatpush3.bf16.msra.mxu1 %v5186_v36 }
 0x4c8   :  { %4507 = vmatprep.subr.bf16.mxu1 %v5762_v61  ;;  %4530 = vmatpush3.bf16.msra.mxu0 %v5113_v43 }
 0x4c9   :  { %4531 = vmatprep.subr.bf16.mxu0 %v5762_v61 }
 0x4cb   :  { %4509 = vmatpush3.bf16.msra.mxu1 %v5194_v42 }
 0x4cc   :  { %4534 = vmatprep.subr.bf16.mxu1 %v5762_v61  ;;  %4533 = vmatpush3.bf16.msra.mxu0 %v5119_v48 }
 0x4cd   :  { %4558 = vmatprep.subr.bf16.mxu0 %v5762_v61 }
 0x4ce   :  { %3737 = vmatmul.mubr.f32.vlgmr.msra.gmra.mrb[22].mxu1 %v5501_v3 }
 0x4cf   :  { %4536 = vmatpush3.bf16.msra.mxu1 %v5122_v53  ;;  %3806 = vmatprep.mubr.msk.f32.mxu1 %vm4945_vm2, %v5761_v0 }
 0x4d0   :  { %4537 = vmatprep.subr.bf16.mxu1 %v5762_v61 }
 0x4d3   :  { %4539 = vmatpush3.bf16.msra.mxu1 %v5132_v62 }
 0x4d4   :  { %4540 = vmatprep.subr.bf16.mxu1 %v5762_v61 }
 0x4d7   :  { %4542 = vmatpush3.bf16.msra.mxu1 %v5144_v57 }
 0x4d8   :  { %4543 = vmatprep.subr.bf16.mxu1 %v5762_v61 }
 0x4db   :  { %4545 = vmatpush3.bf16.msra.mxu1 %v5154_v14 }
 0x4dc   :  { %4546 = vmatprep.subr.bf16.mxu1 %v5762_v61 }
 0x4df   :  { %4548 = vmatpush3.bf16.msra.mxu1 %v5164_v11 }
 0x4e0   :  { %4549 = vmatprep.subr.bf16.mxu1 %v5762_v61 }
 0x4e3   :  { %4551 = vmatpush3.bf16.msra.mxu1 %v5174_v20 }
 0x4e4   :  { %4552 = vmatprep.subr.bf16.mxu1 %v5762_v61 }
 0x4e7   :  { %4554 = vmatpush3.bf16.msra.mxu1 %v5182_v34 }
 0x4e8   :  { %4555 = vmatprep.subr.bf16.mxu1 %v5762_v61 }
 0x4eb   :  { %4557 = vmatpush3.bf16.msra.mxu1 %v5190_v41 }
 0x4ec   :  { %4582 = vmatprep.subr.bf16.mxu1 %v5762_v61 }
 0x581   :  { %v1610_v9 = vpop.f32.mrb[20].mxu1  ;;  %v1680_v52 = vpop.f32.mrb[28].mxu0 }
 0x582   :  { %v1686_v46 = vadd.f32 %v1610_v9, %v5259_v15  ;;  %v1695_v55 = vadd.f32 %v1680_v52, %v5263_v22  ;;  %v3668_v18 = vpop.f32.mrb[21].mxu1  ;;  %v3703_v60 = vpop.f32.mrb[29].mxu0 }
 0x584   :  { %v2591_v17 = vmul.f32 -1.442695, %v1686_v46  ;;  %v2592_v35 = vmul.f32 -1.442695, %v1695_v55 }
 0x586   :  { %4779 = vpow2.f32 %v2591_v17 }
 0x587   :  { %4781 = vpow2.f32 %v2592_v35 }
 0x590   :  { %v4780_v24 = vpop.eup %4779 }
 0x591   :  { %v1690_v31 = vadd.f32 1.0, %v4780_v24  ;;  %v4782_v47 = vpop.eup %4781 }
 0x592   :  { %v1699_v51 = vadd.f32 1.0, %v4782_v47 }
 0x593   :  { %4783 = vrcp.f32 %v1690_v31 }
 0x594   :  { %4785 = vrcp.f32 %v1699_v51 }
 0x59d   :  { %v4784_v1 = vpop.eup %4783 }
 0x59e   :  { %v4786_v7 = vpop.eup %4785 }
 0x59f   :  { %v1777_v56 = vsub.f32 1.0, %v4786_v7  ;;  %v1779_v25 = vmul.f32 %v4786_v7, %v5501_v3 }
 0x5a1   :  { %v1770_v38 = vpop.f32.mrb[22].mxu1 }
 0x5a2   :  { %v1771_v50 = vadd.f32 %v5293_v59, %v1770_v38  ;;  %v3738_v26 = vpop.f32.mrb[23].mxu1 }
 0x5a4   :  { %v1774_v15 = vmul.f32 %v4784_v1, %v1771_v50 }
 0x5a6   :  { %v1775_v22 = vadd.f32 %v1774_v15, %v5284_v44 }
 0x5a8   :  { %4787 = vtanh.f32 %v1775_v22  ;;  %v2036_v22 = vpop.permute.xlu1 %2035 }
 0x5a9   :  { %vm2037_vm14 = vcmp.eq.s32.totalorder %v2036_v22, 1 }
 0x5b2   :  { %v4788_v5 = vpop.eup %4787 }
 0x5b3   :  { %v1778_v6 = vmul.f32 %v4788_v5, %v1777_v56 }
 0x5b5   :  { %v1780_v32 = vadd.f32 %v1779_v25, %v1778_v6 }
 0x5b7   :  { %v1789_v27 = vsel %vm1788_vm13, %v1780_v32, 0.0  ;;  %v5566_v40 = vsel %vm1788_vm13, %v1780_v32, %v5501_v3 }
 0x5b8   :  { %1791 = vst [vmem:[#allocation12 + $0x20] sm:$0xff] %v1789_v27  ;;  %3772 = vmatmul.mubr.f32.vlgmr.msra.gmra.mrb[30].mxu0 %v5566_v40  ;;  %3807 = vmatmul.mubr.f32.vlgmr.msra.gmra.mrb[24].mxu1 %v5566_v40 }
 0x5b9   :  { %4560 = vmatpush3.bf16.msra.mxu0 %v5126_v54  ;;  %3841 = vmatprep.mubr.msk.f32.mxu0 %vm4945_vm2, %v5761_v0 }
 0x5ba   :  { %4561 = vmatprep.subr.bf16.mxu0 %v5762_v61  ;;  %4584 = vmatpush3.bf16.msra.mxu1 %v5049_v58 }
 0x5bb   :  { %4585 = vmatprep.subr.bf16.mxu1 %v5762_v61  ;;  %3876 = vmatprep.mubr.msk.f32.mxu1 %vm4945_vm2, %v5761_v0 }
 0x5bd   :  { %4563 = vmatpush3.bf16.msra.mxu0 %v5136_v63 }
 0x5be   :  { %4564 = vmatprep.subr.bf16.mxu0 %v5762_v61  ;;  %4587 = vmatpush3.bf16.msra.mxu1 %v5059_v4 }
 0x5bf   :  { %4588 = vmatprep.subr.bf16.mxu1 %v5762_v61 }
 0x5c1   :  { %4566 = vmatpush3.bf16.msra.mxu0 %v5149_v8 }
 0x5c2   :  { %4567 = vmatprep.subr.bf16.mxu0 %v5762_v61  ;;  %4590 = vmatpush3.bf16.msra.mxu1 %v5071_v12 }
 0x5c3   :  { %4591 = vmatprep.subr.bf16.mxu1 %v5762_v61 }
 0x5c5   :  { %4569 = vmatpush3.bf16.msra.mxu0 %v5159_v10 }
 0x5c6   :  { %4570 = vmatprep.subr.bf16.mxu0 %v5762_v61  ;;  %4593 = vmatpush3.bf16.msra.mxu1 %v5088_v21 }
 0x5c7   :  { %4594 = vmatprep.subr.bf16.mxu1 %v5762_v61 }
 0x5c9   :  { %4572 = vmatpush3.bf16.msra.mxu0 %v5170_v19 }
 0x5ca   :  { %4573 = vmatprep.subr.bf16.mxu0 %v5762_v61  ;;  %4596 = vmatpush3.bf16.msra.mxu1 %v5098_v29 }
 0x5cb   :  { %4597 = vmatprep.subr.bf16.mxu1 %v5762_v61 }
 0x5cd   :  { %4575 = vmatpush3.bf16.msra.mxu0 %v5178_v28 }
 0x5ce   :  { %4576 = vmatprep.subr.bf16.mxu0 %v5762_v61  ;;  %4599 = vmatpush3.bf16.msra.mxu1 %v5107_v37 }
 0x5cf   :  { %4600 = vmatprep.subr.bf16.mxu1 %v5762_v61 }
 0x5d1   :  { %4578 = vmatpush3.bf16.msra.mxu0 %v5186_v36 }
 0x5d2   :  { %4579 = vmatprep.subr.bf16.mxu0 %v5762_v61  ;;  %4602 = vmatpush3.bf16.msra.mxu1 %v5113_v43 }
 0x5d3   :  { %4603 = vmatprep.subr.bf16.mxu1 %v5762_v61 }
 0x5d5   :  { %4581 = vmatpush3.bf16.msra.mxu0 %v5194_v42 }
 0x5d6   :  { %4606 = vmatprep.subr.bf16.mxu0 %v5762_v61  ;;  %4605 = vmatpush3.bf16.msra.mxu1 %v5119_v48 }
 0x5d7   :  { %4630 = vmatprep.subr.bf16.mxu1 %v5762_v61 }
 0x5d8   :  { %3842 = vmatmul.mubr.f32.vlgmr.msra.gmra.mrb[32].mxu0 %v5566_v40 }
 0x5d9   :  { %4608 = vmatpush3.bf16.msra.mxu0 %v5122_v53  ;;  %3911 = vmatprep.mubr.msk.f32.mxu0 %vm4945_vm2, %v5761_v0 }
 0x5da   :  { %4609 = vmatprep.subr.bf16.mxu0 %v5762_v61 }
 0x5dd   :  { %4611 = vmatpush3.bf16.msra.mxu0 %v5132_v62 }
 0x5de   :  { %4612 = vmatprep.subr.bf16.mxu0 %v5762_v61 }
 0x5e1   :  { %4614 = vmatpush3.bf16.msra.mxu0 %v5144_v57 }
 0x5e2   :  { %4615 = vmatprep.subr.bf16.mxu0 %v5762_v61 }
 0x5e5   :  { %4617 = vmatpush3.bf16.msra.mxu0 %v5154_v14 }
 0x5e6   :  { %4618 = vmatprep.subr.bf16.mxu0 %v5762_v61 }
 0x5e9   :  { %4620 = vmatpush3.bf16.msra.mxu0 %v5164_v11 }
 0x5ea   :  { %4621 = vmatprep.subr.bf16.mxu0 %v5762_v61 }
 0x5ed   :  { %4623 = vmatpush3.bf16.msra.mxu0 %v5174_v20 }
 0x5ee   :  { %4624 = vmatprep.subr.bf16.mxu0 %v5762_v61 }
 0x5f1   :  { %4626 = vmatpush3.bf16.msra.mxu0 %v5182_v34 }
 0x5f2   :  { %4627 = vmatprep.subr.bf16.mxu0 %v5762_v61 }
 0x5f5   :  { %4629 = vmatpush3.bf16.msra.mxu0 %v5190_v41 }
 0x5f6   :  { %4654 = vmatprep.subr.bf16.mxu0 %v5762_v61 }
 0x68b   :  { %v1859_v44 = vpop.f32.mrb[30].mxu0  ;;  %v1929_v2 = vpop.f32.mrb[24].mxu1 }
 0x68c   :  { %v1935_v45 = vadd.f32 %v1859_v44, %v5257_v13  ;;  %v1944_v3 = vadd.f32 %v1929_v2, %v5261_v16  ;;  %v3773_v9 = vpop.f32.mrb[31].mxu0  ;;  %v3808_v52 = vpop.f32.mrb[25].mxu1 }
 0x68e   :  { %v2593_v46 = vmul.f32 -1.442695, %v1935_v45  ;;  %v2594_v55 = vmul.f32 -1.442695, %v1944_v3 }
 0x690   :  { %4789 = vpow2.f32 %v2593_v46 }
 0x691   :  { %4791 = vpow2.f32 %v2594_v55 }
 0x69a   :  { %v4790_v18 = vpop.eup %4789 }
 0x69b   :  { %v1939_v60 = vadd.f32 1.0, %v4790_v18  ;;  %v4792_v17 = vpop.eup %4791 }
 0x69c   :  { %v1948_v35 = vadd.f32 1.0, %v4792_v17  ;;  %v5766_v17 = vld [vmem:[#allocation21_spill] sm:$0xff] }
 0x69d   :  { %4793 = vrcp.f32 %v1939_v60 }
 0x69e   :  { %4795 = vrcp.f32 %v1948_v35 }
 0x6a7   :  { %v4794_v51 = vpop.eup %4793 }
 0x6a8   :  { %v4796_v38 = vpop.eup %4795 }
 0x6a9   :  { %v2026_v50 = vsub.f32 1.0, %v4796_v38  ;;  %v2028_v15 = vmul.f32 %v4796_v38, %v5566_v40 }
 0x6ab   :  { %v2019_v24 = vpop.f32.mrb[32].mxu0 }
 0x6ac   :  { %v2020_v31 = vadd.f32 %v5293_v59, %v2019_v24  ;;  %v3843_v47 = vpop.f32.mrb[33].mxu0 }
 0x6ae   :  { %v2023_v13 = vmul.f32 %v4794_v51, %v2020_v31  ;;  %v2534_v51 = vpop.permute.xlu1 %2533 }
 0x6af   :  { %vm2535_vm0 = vcmp.eq.s32.totalorder %v2534_v51, 1 }
 0x6b0   :  { %v2024_v16 = vadd.f32 %v2023_v13, %v5282_v23 }
 0x6b2   :  { %4797 = vtanh.f32 %v2024_v16 }
 0x6bc   :  { %v4798_v26 = vpop.eup %4797 }
 0x6bd   :  { %v2027_v1 = vmul.f32 %v4798_v26, %v2026_v50 }
 0x6bf   :  { %v2029_v7 = vadd.f32 %v2028_v15, %v2027_v1 }
 0x6c1   :  { %v2038_v56 = vsel %vm2037_vm14, %v2029_v7, 0.0  ;;  %v5631_v5 = vsel %vm2037_vm14, %v2029_v7, %v5566_v40 }
 0x6c2   :  { %2040 = vst [vmem:[#allocation12 + $0x28] sm:$0xff] %v2038_v56  ;;  %3877 = vmatmul.mubr.f32.vlgmr.msra.gmra.mrb[26].mxu1 %v5631_v5  ;;  %3912 = vmatmul.mubr.f32.vlgmr.msra.gmra.mrb[34].mxu0 %v5631_v5 }
 0x6c3   :  { %4632 = vmatpush3.bf16.msra.mxu1 %v5126_v54  ;;  %3946 = vmatprep.mubr.msk.f32.mxu1 %vm4945_vm2, %v5761_v0 }
 0x6c4   :  { %4633 = vmatprep.subr.bf16.mxu1 %v5762_v61  ;;  %4656 = vmatpush3.bf16.msra.mxu0 %v5049_v58 }
 0x6c5   :  { %4657 = vmatprep.subr.bf16.mxu0 %v5762_v61  ;;  %3981 = vmatprep.mubr.msk.f32.mxu0 %vm4945_vm2, %v5761_v0 }
 0x6c7   :  { %4635 = vmatpush3.bf16.msra.mxu1 %v5136_v63 }
 0x6c8   :  { %4636 = vmatprep.subr.bf16.mxu1 %v5762_v61  ;;  %4659 = vmatpush3.bf16.msra.mxu0 %v5059_v4 }
 0x6c9   :  { %4660 = vmatprep.subr.bf16.mxu0 %v5762_v61 }
 0x6cb   :  { %4638 = vmatpush3.bf16.msra.mxu1 %v5149_v8 }
 0x6cc   :  { %4639 = vmatprep.subr.bf16.mxu1 %v5762_v61  ;;  %4662 = vmatpush3.bf16.msra.mxu0 %v5071_v12 }
 0x6cd   :  { %4663 = vmatprep.subr.bf16.mxu0 %v5762_v61 }
 0x6cf   :  { %4641 = vmatpush3.bf16.msra.mxu1 %v5159_v10 }
 0x6d0   :  { %4642 = vmatprep.subr.bf16.mxu1 %v5762_v61  ;;  %4665 = vmatpush3.bf16.msra.mxu0 %v5088_v21 }
 0x6d1   :  { %4666 = vmatprep.subr.bf16.mxu0 %v5762_v61 }
 0x6d3   :  { %4644 = vmatpush3.bf16.msra.mxu1 %v5170_v19 }
 0x6d4   :  { %4645 = vmatprep.subr.bf16.mxu1 %v5762_v61  ;;  %4668 = vmatpush3.bf16.msra.mxu0 %v5098_v29 }
 0x6d5   :  { %4669 = vmatprep.subr.bf16.mxu0 %v5762_v61 }
 0x6d7   :  { %4647 = vmatpush3.bf16.msra.mxu1 %v5178_v28 }
 0x6d8   :  { %4648 = vmatprep.subr.bf16.mxu1 %v5762_v61  ;;  %4671 = vmatpush3.bf16.msra.mxu0 %v5107_v37 }
 0x6d9   :  { %4672 = vmatprep.subr.bf16.mxu0 %v5762_v61 }
 0x6db   :  { %4650 = vmatpush3.bf16.msra.mxu1 %v5186_v36 }
 0x6dc   :  { %4651 = vmatprep.subr.bf16.mxu1 %v5762_v61  ;;  %4674 = vmatpush3.bf16.msra.mxu0 %v5113_v43 }
 0x6dd   :  { %4675 = vmatprep.subr.bf16.mxu0 %v5762_v61 }
 0x6df   :  { %4653 = vmatpush3.bf16.msra.mxu1 %v5194_v42 }
 0x6e0   :  { %4678 = vmatprep.subr.bf16.mxu1 %v5762_v61  ;;  %4677 = vmatpush3.bf16.msra.mxu0 %v5119_v48 }
 0x6e1   :  { %4702 = vmatprep.subr.bf16.mxu0 %v5762_v61 }
 0x6e2   :  { %3947 = vmatmul.mubr.f32.vlgmr.msra.gmra.mrb[28].mxu1 %v5631_v5 }
 0x6e3   :  { %4680 = vmatpush3.bf16.msra.mxu1 %v5122_v53  ;;  %4016 = vmatprep.mubr.msk.f32.mxu1 %vm4945_vm2, %v5761_v0 }
 0x6e4   :  { %4681 = vmatprep.subr.bf16.mxu1 %v5762_v61 }
 0x6e7   :  { %4683 = vmatpush3.bf16.msra.mxu1 %v5132_v62 }
 0x6e8   :  { %4684 = vmatprep.subr.bf16.mxu1 %v5762_v61 }
 0x6eb   :  { %4686 = vmatpush3.bf16.msra.mxu1 %v5144_v57 }
 0x6ec   :  { %4687 = vmatprep.subr.bf16.mxu1 %v5762_v61 }
 0x6ef   :  { %4689 = vmatpush3.bf16.msra.mxu1 %v5154_v14 }
 0x6f0   :  { %4690 = vmatprep.subr.bf16.mxu1 %v5762_v61 }
 0x6f3   :  { %4692 = vmatpush3.bf16.msra.mxu1 %v5164_v11 }
 0x6f4   :  { %4693 = vmatprep.subr.bf16.mxu1 %v5762_v61 }
 0x6f7   :  { %4695 = vmatpush3.bf16.msra.mxu1 %v5174_v20  ;;  %v4819_v20 = vld [vmem:[%s5749_s5] ss:$0 sm:$0xff]  ;;  %s4947_s5 = smov [#allocation12]  }
 0x6f8   :  { %4696 = vmatprep.subr.bf16.mxu1 %v5762_v61  ;;  %s2550_s2 = sshll.u32 %s4947_s5, 4  ;;  %s2551_s2 = int_to_ptr.vmem [resolvable:$true] %s2550_s2 }
 0x6f9   :  { %s4886_s28 = scalar_lea.vmem %s2551_s2, 1024  ;;  %p4891_p11 = scmp.lt.s32.totalorder %s2551_s2, %s2551_s2 }
 0x6fa   :  { %p4887_p10 = scmp.ne.s32.totalorder %s2551_s2, %s4886_s28  ;;  %p4892_p12 = scmp.lt.s32.totalorder %s4886_s28, %s4886_s28 }
 0x6fb   :  { %4698 = vmatpush3.bf16.msra.mxu1 %v5182_v34 }
 0x6fc   :  { %4699 = vmatprep.subr.bf16.mxu1 %v5762_v61  ;;  %p4893_p13 = por %p4892_p12, %p4891_p11 }
 0x6fe   :  { %p4894_p0 = pnand %p4893_p13, %p4887_p10 }
 0x6ff   :  { %4701 = vmatpush3.bf16.msra.mxu1 %v5190_v41 }
 0x795   :  { %v2108_v58 = vpop.f32.mrb[26].mxu1  ;;  %v2178_v4 = vpop.f32.mrb[34].mxu0 }
 0x796   :  { %v2184_v12 = vadd.f32 %v2108_v58, %v5267_v30  ;;  %v2193_v21 = vadd.f32 %v2178_v4, %v5271_v33  ;;  %v3878_v29 = vpop.f32.mrb[27].mxu1  ;;  %v3913_v37 = vpop.f32.mrb[35].mxu0 }
 0x798   :  { %v2595_v43 = vmul.f32 -1.442695, %v2184_v12  ;;  %v2596_v48 = vmul.f32 -1.442695, %v2193_v21 }
 0x79a   :  { %4799 = vpow2.f32 %v2595_v43 }
 0x79b   :  { %4801 = vpow2.f32 %v2596_v48 }
 0x7a4   :  { %v4800_v53 = vpop.eup %4799 }
 0x7a5   :  { %v2188_v62 = vadd.f32 1.0, %v4800_v53  ;;  %v4802_v57 = vpop.eup %4801 }
 0x7a6   :  { %v2197_v14 = vadd.f32 1.0, %v4802_v57 }
 0x7a7   :  { %4803 = vrcp.f32 %v2188_v62 }
 0x7a8   :  { %4805 = vrcp.f32 %v2197_v14 }
 0x7b1   :  { %v4804_v30 = vpop.eup %4803 }
 0x7b2   :  { %v4806_v59 = vpop.eup %4805 }
 0x7b3   :  { %v2275_v6 = vsub.f32 1.0, %v4806_v59  ;;  %v2277_v27 = vmul.f32 %v4806_v59, %v5631_v5 }
 0x7b5   :  { %v2268_v11 = vpop.f32.mrb[28].mxu1 }
 0x7b6   :  { %v2269_v34 = vadd.f32 %v4819_v20, %v2268_v11  ;;  %v3948_v41 = vpop.f32.mrb[29].mxu1 }
 0x7b8   :  { %v2272_v33 = vmul.f32 %v4804_v30, %v2269_v34 }
 0x7ba   :  { %v2273_v23 = vadd.f32 %v2272_v33, %v5288_v39  ;;  %v5765_v39 = vld [vmem:[#allocation20_spill] sm:$0xff] }
 0x7bc   :  { %4807 = vtanh.f32 %v2273_v23 }
 0x7c6   :  { %v4808_v25 = vpop.eup %4807 }
 0x7c7   :  { %v2276_v32 = vmul.f32 %v4808_v25, %v2275_v6 }
 0x7c9   :  { %v2278_v40 = vadd.f32 %v2277_v27, %v2276_v32 }
 0x7cb   :  { %v2287_v44 = vsel %vm2286_vm15, %v2278_v40, 0.0  ;;  %v2290_v2 = vsel %vm2286_vm15, %v2278_v40, %v5631_v5 }
 0x7cc   :  { %2289 = vst [vmem:[#allocation12 + $0x30] sm:$0xff] %v2287_v44  ;;  %3982 = vmatmul.mubr.f32.vlgmr.msra.gmra.mrb[36].mxu0 %v2290_v2  ;;  %4017 = vmatmul.mubr.f32.vlgmr.msra.gmra.mrb[30].mxu1 %v2290_v2 }
 0x7cd   :  { %4704 = vmatpush3.bf16.msra.mxu0 %v5126_v54  ;;  %4051 = vmatprep.mubr.msk.f32.mxu0 %vm4945_vm2, %v5761_v0 }
 0x7ce   :  { %4705 = vmatprep.subr.bf16.mxu0 %v5762_v61 }
 0x7d1   :  { %4707 = vmatpush3.bf16.msra.mxu0 %v5136_v63 }
 0x7d2   :  { %4708 = vmatprep.subr.bf16.mxu0 %v5762_v61 }
 0x7d5   :  { %4710 = vmatpush3.bf16.msra.mxu0 %v5149_v8  ;;  %v5764_v8 = vld [vmem:[#allocation19_spill] sm:$0xff] }
 0x7d6   :  { %4711 = vmatprep.subr.bf16.mxu0 %v5762_v61 }
 0x7d9   :  { %4713 = vmatpush3.bf16.msra.mxu0 %v5159_v10 }
 0x7da   :  { %4714 = vmatprep.subr.bf16.mxu0 %v5762_v61 }
 0x7dd   :  { %4716 = vmatpush3.bf16.msra.mxu0 %v5170_v19 }
 0x7de   :  { %4717 = vmatprep.subr.bf16.mxu0 %v5762_v61 }
 0x7e1   :  { %4719 = vmatpush3.bf16.msra.mxu0 %v5178_v28 }
 0x7e2   :  { %4720 = vmatprep.subr.bf16.mxu0 %v5762_v61 }
 0x7e5   :  { %4722 = vmatpush3.bf16.msra.mxu0 %v5186_v36 }
 0x7e6   :  { %4723 = vmatprep.subr.bf16.mxu0 %v5762_v61 }
 0x7e9   :  { %4725 = vmatpush3.bf16.msra.mxu0 %v5194_v42 }
 0x7ec   :  { %4052 = vmatmul.mubr.f32.vlgmr.msra.gmra.mrb[38].mxu0 %v2290_v2 }
 0x89f   :  { %v2357_v54 = vpop.f32.mrb[36].mxu0  ;;  %v2427_v63 = vpop.f32.mrb[30].mxu1 }
 0x8a0   :  { %v2433_v10 = vadd.f32 %v2357_v54, %v5764_v8  ;;  %v2442_v0 = vadd.f32 %v2427_v63, %v5765_v39  ;;  %v3983_v19 = vpop.f32.mrb[37].mxu0  ;;  %v4018_v45 = vpop.f32.mrb[31].mxu1 }
 0x8a2   :  { %v2597_v3 = vmul.f32 -1.442695, %v2433_v10  ;;  %v2598_v28 = vmul.f32 -1.442695, %v2442_v0 }
 0x8a4   :  { %4809 = vpow2.f32 %v2597_v3 }
 0x8a5   :  { %4811 = vpow2.f32 %v2598_v28 }
 0x8ae   :  { %v4810_v9 = vpop.eup %4809 }
 0x8af   :  { %v2437_v52 = vadd.f32 1.0, %v4810_v9  ;;  %v4812_v36 = vpop.eup %4811 }
 0x8b0   :  { %v2446_v61 = vadd.f32 1.0, %v4812_v36 }
 0x8b1   :  { %4813 = vrcp.f32 %v2437_v52 }
 0x8b2   :  { %4815 = vrcp.f32 %v2446_v61 }
 0x8bb   :  { %v4814_v18 = vpop.eup %4813 }
 0x8bc   :  { %v4816_v24 = vpop.eup %4815 }
 0x8bd   :  { %v2524_v31 = vsub.f32 1.0, %v4816_v24  ;;  %v2526_v13 = vmul.f32 %v4816_v24, %v2290_v2 }
 0x8bf   :  { %v2517_v46 = vpop.f32.mrb[38].mxu0 }
 0x8c0   :  { %v2518_v42 = vadd.f32 %v4819_v20, %v2517_v46  ;;  %v4053_v55 = vpop.f32.mrb[39].mxu0 }
 0x8c2   :  { %v2521_v60 = vmul.f32 %v4814_v18, %v2518_v42 }
 0x8c4   :  { %v2522_v35 = vadd.f32 %v2521_v60, %v5766_v17 }
 0x8c6   :  { %4817 = vtanh.f32 %v2522_v35 }
 0x8d0   :  { %v4818_v47 = vpop.eup %4817 }
 0x8d1   :  { %v2525_v16 = vmul.f32 %v4818_v47, %v2524_v31 }
 0x8d3   :  { %v2527_v38 = vadd.f32 %v2526_v13, %v2525_v16 }
 0x8d5   :  { %v2536_v50 = vsel %vm2535_vm0, %v2527_v38, 0.0  ;;  %v2539_v26 = vsel %vm2535_vm0, %v2527_v38, %v2290_v2 }
 0x8d6   :  { %2538 = vst [vmem:[#allocation12 + $0x38] sm:$0xff] %v2536_v50  ;;  %2544 = vst [vmem:[#allocation13] sm:$0xff] %v2539_v26 }
 0x8d7   :  { %4897 = shalt.err (!%p4894_p0)
}
 0x8d8   :  { %s4898_s8 = scalar_lea.hbm %s5750_s6, 1024 }
 0x8d9   :  { %p4899_p1 = scmp.ne.s32.totalorder %s5750_s6, %s4898_s8  ;;  %p4902_p2 = scmp.lt.u32.totalorder %s4898_s8, %s5750_s6 }
 0x8db   :  { %p4904_p3 = pnand %p4902_p2, %p4899_p1 }
 0x8dd   :  { %4907 = shalt.err (!%p4904_p3)
}
 0x8de   :  { %2556 = dma.vmem_to_hbm [thread:$0]  %s2551_s2, 1024, %s5750_s6, [#allocation8], %s4940_s13, %s4940_s13, %s4941_s14  }
 0x8df   :  { %s4908_s27 = scalar_lea.vmem %s2564_s26, 128  ;;  %p4913_p5 = scmp.lt.s32.totalorder %s2564_s26, %s2564_s26 }
 0x8e0   :  { %p4909_p4 = scmp.ne.s32.totalorder %s2564_s26, %s4908_s27  ;;  %p4914_p6 = scmp.lt.s32.totalorder %s4908_s27, %s4908_s27 }
 0x8e2   :  { %p4915_p7 = por %p4914_p6, %p4913_p5 }
 0x8e4   :  { %p4916_p8 = pnand %p4915_p7, %p4909_p4 }
 0x8e6   :  { %4919 = shalt.err (!%p4916_p8)
}
 0x8e7   :  { %s4920_s1 = scalar_lea.hbm %s5751_s7, 128 }
 0x8e8   :  { %p4921_p9 = scmp.ne.s32.totalorder %s5751_s7, %s4920_s1  ;;  %p4924_p10 = scmp.lt.u32.totalorder %s4920_s1, %s5751_s7 }
 0x8ea   :  { %p4926_p11 = pnand %p4924_p10, %p4921_p9 }
 0x8ec   :  { %4929 = shalt.err (!%p4926_p11)
}
 0x8ed   :  { %2566 = dma.vmem_to_hbm [thread:$0]  %s2564_s26, 128, %s5751_s7, [#allocation14]  }
 0x8ee   :  { %4934 = dma.done.wait [#allocation8], 1024  }
 0x8ef   :  { %4935 = vsyncadd [#allocation8], 4294966272 }
 0x8f0   :  { %4936 = dma.done.wait [#allocation14], 128  }
 0x8f1   :  { %4937 = vsyncadd [#allocation14], 4294967168 }
 0x8f2   :  { %2573 = vsyncpa [#allocation7], 1 }
 0x8f3   :  { %2574 = vsyncpa [#allocation10], 1 }
 0x8f4   :  { %2575 = vsyncpa [#allocation8], 1 }
 0x8f5   :  { %2576 = vsyncpa [#allocation14], 1 }

</bundles_post_ra>
